<compile_context>
chip_gen: v6e
topology: v6e:2x2x1
jax: 0.10.0
libtpu: 0.0.40
codegen_flags: <defaults>
</compile_context>

<pallas_src>
import functools

import jax
import jax.numpy as jnp
from jax.experimental import pallas as pl
from jax.experimental.pallas import tpu as pltpu

VMEM = pltpu.MemorySpace.VMEM
SMEM = pltpu.MemorySpace.SMEM


def _round_up(x, m):
    return (x + m - 1) // m * m


# ----------------------------------------------------------------------------
# Kernel 1: shared point encoding (first Linear of mlp1, factored)
# ----------------------------------------------------------------------------
def encode_kernel(pts_ref, feat_ref, w1pn_ref, w1f_ref, b1_ref, base_ref):
    # pts_ref: (T, 8) f32, feat_ref: (T, CP) bf16, w1pn: (8, CP) bf16 (already
    # scaled by -1/radius), w1f: (CP, CP) bf16, b1: (1, CP) f32, base: bf16.
    acc = jnp.dot(feat_ref[...], w1f_ref[...], preferred_element_type=jnp.float32)
    acc = acc + jnp.dot(pts_ref[...].astype(jnp.bfloat16), w1pn_ref[...],
                        preferred_element_type=jnp.float32)
    base_ref[...] = (acc + b1_ref[...]).astype(base_ref.dtype)


# ----------------------------------------------------------------------------
# Kernel 2: farthest point sampling (min-distance kept in VMEM scratch)
# ----------------------------------------------------------------------------
def fps_kernel(planes_ref, pflat_ref, idx_ref, mind_ref, *, n_valid, num_samples):
    # planes_ref: (3, 8, M) f32 VMEM (sublane-filled xyz planes)
    # pflat_ref : (3*NP,) f32 SMEM (row-major padded points, scalar reads)
    # idx_ref   : (num_samples,) int32 SMEM output
    # mind_ref  : (8, M) f32 VMEM scratch (min squared distance so far)
    _, ns, nl = planes_ref.shape
    npad = ns * nl

    def flat_ids():
        return (jax.lax.broadcasted_iota(jnp.int32, (ns, nl), 0) * nl
                + jax.lax.broadcasted_iota(jnp.int32, (ns, nl), 1))

    def dist_to(i):
        # scalar coordinate reads from SMEM (no lane masks / cross-lane sums)
        cx = pflat_ref[3 * i]
        cy = pflat_ref[3 * i + 1]
        cz = pflat_ref[3 * i + 2]
        return ((planes_ref[0] - cx) ** 2 + (planes_ref[1] - cy) ** 2
                + (planes_ref[2] - cz) ** 2)

    idx_ref[0] = 0
    ids0 = flat_ids()
    dead0 = jnp.logical_or(ids0 >= n_valid, ids0 == 0)   # padded or already chosen
    mind_ref[...] = jnp.where(dead0, -1.0, dist_to(0))

    def body(i, carry):
        ids = flat_ids()
        mind = mind_ref[...]
        m = jnp.max(mind)
        nxt = jnp.min(jnp.where(mind >= m, ids, npad)).astype(jnp.int32)
        idx_ref[i] = nxt
        # already-selected points drop to -1 so they can never be re-selected
        mind_ref[...] = jnp.where(ids == nxt, -1.0,
                                  jnp.minimum(mind, dist_to(nxt)))
        return carry

    jax.lax.fori_loop(1, num_samples, body, 0)


# ----------------------------------------------------------------------------
# Kernel 3: ball query + rest of mlp1 + masked max-pool
#           grid = (ceil(K/G), N-tiles); G clusters batched per step so the
#           resident `base` tile is reused G times (or globally when nt == 1).
# ----------------------------------------------------------------------------
def group_kernel(idx_ref, pflat_ref, pts_ref, base_ref, w1p_ref, w1b_ref, b1b_ref,
                 pooled_ref, *, n_valid, radius_sq, tile_n, group_size,
                 num_clusters):
    i = pl.program_id(0)
    j = pl.program_id(1)

    @pl.when(j == 0)
    def _init():
        # h2 >= 0 after ReLU, so a 0 init both acts as the identity for the
        # max-pool and gives a safe value for clusters with no in-radius point.
        pooled_ref[...] = jnp.zeros_like(pooled_ref)

    px = pts_ref[:, 0:1]
    py = pts_ref[:, 1:2]
    pz = pts_ref[:, 2:3]
    row_ids = j * tile_n + jax.lax.broadcasted_iota(jnp.int32, (tile_n, 1), 0)
    in_range = row_ids < n_valid
    base_f32 = base_ref[...].astype(jnp.float32)          # cast once per tile

    for g in range(group_size):
        cluster_id = i * group_size + g
        idx = idx_ref[cluster_id]
        cx = pflat_ref[3 * idx]
        cy = pflat_ref[3 * idx + 1]
        cz = pflat_ref[3 * idx + 2]

        dx = px - cx
        dy = py - cy
        dz = pz - cz
        d2 = dx * dx + dy * dy + dz * dz                   # (T, 1)
        valid = jnp.logical_and(d2 <= radius_sq, in_range)
        any_valid = jnp.max(jnp.where(valid, 1.0, 0.0)) > 0.0
        live = jnp.logical_and(any_valid, cluster_id < num_clusters)

        @pl.when(live)                                     # skip empty tiles
        def _compute(g=g, cx=cx, cy=cy, cz=cz, valid=valid):
            # center @ W1_pos rebuilt from 3 scalar * row products (fused gather);
            # per the reference, relpos = center - pt/radius, so this term is
            # intentionally NOT scaled by 1/radius.
            center_proj = (cx * w1p_ref[0:1, :] + cy * w1p_ref[1:2, :]
                           + cz * w1p_ref[2:3, :])
            h1 = jnp.maximum(base_f32 + center_proj, 0.0)            # (T, CP)
            h2 = jnp.dot(h1.astype(jnp.bfloat16), w1b_ref[...],
                         preferred_element_type=jnp.float32) + b1b_ref[...]
            h2 = jnp.where(valid, jnp.maximum(h2, 0.0), 0.0)
            pooled_ref[g:g + 1, :] = jnp.maximum(
                pooled_ref[g:g + 1, :], jnp.max(h2, axis=0, keepdims=True))


# ----------------------------------------------------------------------------
# Kernel 4: mlp2 + final Linear + sigmoid + greedy 3-D NMS
# ----------------------------------------------------------------------------
def head_kernel(pooled_ref, w2a_ref, b2a_ref, w2b_ref, b2b_ref, wf_ref, bf_ref,
                boxes_ref, keep_ref, *, num_clusters, iou_threshold):
    h = jnp.maximum(
        jnp.dot(pooled_ref[...].astype(jnp.bfloat16), w2a_ref[...],
                preferred_element_type=jnp.float32) + b2a_ref[...], 0.0)
    h = jnp.maximum(
        jnp.dot(h.astype(jnp.bfloat16), w2b_ref[...],
                preferred_element_type=jnp.float32) + b2b_ref[...], 0.0)
    raw = jnp.dot(h.astype(jnp.bfloat16), wf_ref[...],
                  preferred_element_type=jnp.float32) + bf_ref[...]
    boxes = 1.0 / (1.0 + jnp.exp(-raw))          # sigmoid over padded (K, 128) slab
    boxes_ref[...] = boxes                       # col0 = score, cols1..6 = coords

    kk = num_clusters
    scores = boxes[:, 0:1]                       # (K, 1), strictly in (0, 1)
    lo = jnp.minimum(boxes[:, 1:4], boxes[:, 4:7])
    hi = jnp.maximum(boxes[:, 1:4], boxes[:, 4:7])
    vol = ((hi[:, 0:1] - lo[:, 0:1]) * (hi[:, 1:2] - lo[:, 1:2])
           * (hi[:, 2:3] - lo[:, 2:3]))          # (K, 1)
    row_ids = jax.lax.broadcasted_iota(jnp.int32, (kk, 1), 0)

    def body(_, carry):
        alive, keep = carry
        s = jnp.where(alive > 0.5, scores, -1.0)
        m = jnp.max(s)
        any_alive = m >= 0.0
        cand = jnp.min(jnp.where(s >= m, row_ids, kk)).astype(jnp.int32)
        is_cand = row_ids == cand
        cand_f = is_cand.astype(jnp.float32)
        c_lo = jnp.sum(cand_f * lo, axis=0, keepdims=True)            # (1, 3)
        c_hi = jnp.sum(cand_f * hi, axis=0, keepdims=True)
        c_vol = jnp.sum(cand_f * vol)                                  # scalar
        d = jnp.maximum(jnp.minimum(hi, c_hi) - jnp.maximum(lo, c_lo), 0.0)
        inter = d[:, 0:1] * d[:, 1:2] * d[:, 2:3]                      # (K, 1)
        iou = inter / (vol + c_vol - inter + 1e-9)
        keep = jnp.where(jnp.logical_and(any_alive, is_cand), 1.0, keep)
        suppress = jnp.logical_or(iou > iou_threshold, is_cand)
        alive = jnp.where(jnp.logical_and(any_alive, suppress), 0.0, alive)
        return alive, keep

    alive0 = jnp.ones((kk, 1), jnp.float32)
    keep0 = jnp.zeros((kk, 1), jnp.float32)
    _, keep = jax.lax.fori_loop(0, kk, body, (alive0, keep0))
    keep_ref[...] = (keep > 0.5).astype(jnp.int32)


# ----------------------------------------------------------------------------
# Tiling / VMEM-budget selection (generation-aware: v7x has 64 MiB VMEM)
# ----------------------------------------------------------------------------
def _pick_tiling(n, c, k):
    cp = _round_up(c, 128)
    np_ = _round_up(n, 16)
    g = 8 if k >= 8 else k
    kpad = _round_up(k, g)

    try:
        vmem_cap = int(pltpu.get_tpu_info().vmem_capacity_bytes)
    except Exception:
        vmem_cap = 64 * 1024 * 1024                       # conservative (v7x)
    budget = min((vmem_cap * 3) // 4, 100 * 1024 * 1024)  # <=48 MiB v7x, ~96 MiB v5e/v6e

    def fits(tile):
        pts = 2 * tile * 8 * 4                 # f32 points, double-buffered
        base = 2 * tile * cp * 2               # bf16 base
        feats = 2 * tile * cp * 2              # bf16 features (encode only)
        weights = 2 * (cp * cp * 2 + 8 * cp * 4 + cp * 4)
        pooled = 2 * g * cp * 4
        enc = pts + feats + weights + base
        grp = pts + base + weights + pooled
        return max(enc, grp) + (2 << 20) <= budget

    if fits(np_):
        tile_n = np_                            # nt == 1: base stays VMEM-resident
    else:
        tile_n = 512
        while tile_n * 2 <= np_ and fits(tile_n * 2):
            tile_n *= 2
        np_ = _round_up(np_, tile_n)
    return np_, cp, tile_n, g, kpad, int(budget)


# ----------------------------------------------------------------------------
# Wrapper
# ----------------------------------------------------------------------------
@functools.partial(jax.jit,
                   static_argnames=("num_clusters", "radius", "nms_iou_threshold"))
def detection_head_forward(vote_points, vote_features, params, num_clusters, radius,
                           nms_iou_threshold):
    n = vote_points.shape[0]
    c = vote_features.shape[1]
    k = num_clusters
    if k > n:
        raise ValueError("num_clusters must be <= number of points")

    np_, cp, tile_n, g, kpad, vmem_budget = _pick_tiling(n, c, k)
    nt = np_ // tile_n
    kg = kpad // g
    fp = 128                                   # padded width of the 7-wide head
    m = np_ // 8

    # ---- pad inputs / parameters to lane-dense shapes -----------------------
    pts_pad = jnp.zeros((np_, 8), jnp.float32).at[:n, :3].set(vote_points)
    feat_pad = jnp.zeros((np_, cp), jnp.bfloat16).at[:n, :c].set(
        vote_features.astype(jnp.bfloat16))
    pts_flat = pts_pad[:, :3].reshape(-1)                 # (3*NP,) SMEM scalar reads
    pts_planes = pts_pad[:, :3].T.reshape(3, 8, m)        # sublane-filled FPS layout

    bf16 = jnp.bfloat16
    # per-point positional weight with -1/radius folded in (reference precedence:
    # relpos = center - pt / radius)
    w1pn = jnp.zeros((8, cp), bf16).at[:3, :c].set(
        (params["w1_pos"] * (-1.0 / radius)).astype(bf16))
    w1p = jnp.zeros((8, cp), jnp.float32).at[:3, :c].set(params["w1_pos"])
    w1f = jnp.zeros((cp, cp), bf16).at[:c, :c].set(params["w1_feat"].astype(bf16))
    b1a = jnp.zeros((1, cp), jnp.float32).at[0, :c].set(params["b1a"])
    w1b = jnp.zeros((cp, cp), bf16).at[:c, :c].set(params["w1b"].astype(bf16))
    b1b = jnp.zeros((1, cp), jnp.float32).at[0, :c].set(params["b1b"])
    w2a = jnp.zeros((cp, cp), bf16).at[:c, :c].set(params["w2a"].astype(bf16))
    b2a = jnp.zeros((1, cp), jnp.float32).at[0, :c].set(params["b2a"])
    w2b = jnp.zeros((cp, cp), bf16).at[:c, :c].set(params["w2b"].astype(bf16))
    b2b = jnp.zeros((1, cp), jnp.float32).at[0, :c].set(params["b2b"])
    wf = jnp.zeros((cp, fp), bf16).at[:c, :7].set(params["wf"].astype(bf16))
    bf = jnp.zeros((1, fp), jnp.float32).at[0, :7].set(params["bf"])

    # ---- kernel 1: shared point encoding (tiled over N, megacore-parallel) --
    base = pl.pallas_call(
        encode_kernel,
        out_shape=jax.ShapeDtypeStruct((np_, cp), jnp.bfloat16),
        grid=(nt,),
        in_specs=[
            pl.BlockSpec((tile_n, 8), lambda i: (i, 0)),
            pl.BlockSpec((tile_n, cp), lambda i: (i, 0)),
            pl.BlockSpec((8, cp), lambda i: (0, 0)),
            pl.BlockSpec((cp, cp), lambda i: (0, 0)),
            pl.BlockSpec((1, cp), lambda i: (0, 0)),
        ],
        out_specs=pl.BlockSpec((tile_n, cp), lambda i: (i, 0)),
        compiler_params=pltpu.CompilerParams(
            dimension_semantics=("parallel",),
            vmem_limit_bytes=vmem_budget),
    )(pts_pad, feat_pad, w1pn, w1f, b1a)

    # ---- kernel 2: farthest point sampling -----------------------------------
    indices = pl.pallas_call(
        functools.partial(fps_kernel, n_valid=n, num_samples=k),
        out_shape=jax.ShapeDtypeStruct((k,), jnp.int32),
        in_specs=[pl.BlockSpec(memory_space=VMEM),
                  pl.BlockSpec(memory_space=SMEM)],
        out_specs=pl.BlockSpec(memory_space=SMEM),
        scratch_shapes=[pltpu.VMEM((8, m), jnp.float32)],
    )(pts_planes, pts_flat)

    if kpad > k:
        idx_pad = jnp.zeros((kpad,), jnp.int32).at[:k].set(indices)
    else:
        idx_pad = indices

    # ---- kernel 3: ball query + mlp1 + masked max-pool (G clusters / step) ---
    pooled_full = pl.pallas_call(
        functools.partial(group_kernel, n_valid=n, radius_sq=radius * radius,
                          tile_n=tile_n, group_size=g, num_clusters=k),
        out_shape=jax.ShapeDtypeStruct((kpad, cp), jnp.float32),
        grid=(kg, nt),
        in_specs=[
            pl.BlockSpec(memory_space=SMEM),                    # cluster indices
            pl.BlockSpec(memory_space=SMEM),                    # pts_flat
            pl.BlockSpec((tile_n, 8), lambda i, j: (j, 0)),     # points (f32)
            pl.BlockSpec((tile_n, cp), lambda i, j: (j, 0)),    # base (bf16)
            pl.BlockSpec((8, cp), lambda i, j: (0, 0)),         # W1_pos (f32)
            pl.BlockSpec((cp, cp), lambda i, j: (0, 0)),        # W1b (bf16)
            pl.BlockSpec((1, cp), lambda i, j: (0, 0)),         # b1b
        ],
        out_specs=pl.BlockSpec((g, cp), lambda i, j: (i, 0)),
        compiler_params=pltpu.CompilerParams(
            dimension_semantics=("parallel", "arbitrary"),
            vmem_limit_bytes=vmem_budget),
    )(idx_pad, pts_flat, pts_pad, base, w1p, w1b, b1b)
    pooled = pooled_full[:k]

    # ---- kernel 4: mlp2 + final + sigmoid + NMS ------------------------------
    boxes, keep = pl.pallas_call(
        functools.partial(head_kernel, num_clusters=k,
                          iou_threshold=nms_iou_threshold),
        out_shape=(jax.ShapeDtypeStruct((k, fp), jnp.float32),
                   jax.ShapeDtypeStruct((k, 1), jnp.int32)),
        in_specs=[pl.BlockSpec(memory_space=VMEM)] * 7,
        out_specs=(pl.BlockSpec(memory_space=VMEM),
                   pl.BlockSpec(memory_space=VMEM)),
    )(pooled, w2a, b2a, w2b, b2b, wf, bf)

    box_scores = boxes[:, 0]
    box_coordinates = boxes[:, 1:7]
    keep_mask = keep[:, 0].astype(bool)
    # TODO(synk): reference returns a variable-length set of kept boxes; here we
    #             return (coords, scores, keep_mask) with fixed shapes instead.
    return box_coordinates, box_scores, keep_mask


# ----------------------------------------------------------------------------
# Deterministic parameter construction (mirrors the PyTorch module's layers)
# ----------------------------------------------------------------------------
def init_params(key, in_channels):
    c = in_channels
    ks = jax.random.split(key, 11)
    s = 0.1

    def w(k_, shape):
        return s * jax.random.normal(k_, shape, jnp.float32)

    return {
        # mlp1: Linear(3+C, C) split into pos / feature parts, ReLU, Linear(C, C), ReLU
        "w1_pos": w(ks[0], (3, c)),
        "w1_feat": w(ks[1], (c, c)),
        "b1a": w(ks[2], (c,)),
        "w1b": w(ks[3], (c, c)),
        "b1b": w(ks[4], (c,)),
        # mlp2: Linear(C, C), ReLU, Linear(C, C), ReLU
        "w2a": w(ks[5], (c, c)),
        "b2a": w(ks[6], (c,)),
        "w2b": w(ks[7], (c, c)),
        "b2b": w(ks[8], (c,)),
        # final: Linear(C, 7)
        "wf": w(ks[9], (c, 7)),
        "bf": w(ks[10], (7,)),
    }


if __name__ == "__main__":
    N = 16
    in_channels = 4
    num_clusters = 4
    radius = 1.5
    nms_iou_threshold = 0.25

    key = jax.random.PRNGKey(0)
    k_pts, k_feat, k_par = jax.random.split(key, 3)

    vote_points = jax.random.normal(k_pts, (N, 3), jnp.float32)
    vote_features = jax.random.normal(k_feat, (N, in_channels), jnp.float32)
    params = init_params(k_par, in_channels)

    box_coords, box_scores, keep = detection_head_forward(
        vote_points, vote_features, params, num_clusters, radius, nms_iou_threshold)
    jax.block_until_ready((box_coords, box_scores, keep))

    assert box_coords.shape == (num_clusters, 6)
    assert box_scores.shape == (num_clusters,)
    assert keep.shape == (num_clusters,)
    print("KERNEL_OK")
</pallas_src>

<mosaic_0001>
module attributes {stable_mosaic.version = 11 : i64} {
  func.func @encode_kernel(%arg0: i32, %arg1: memref<16x8xf32, #tpu.memory_space<vmem>>, %arg2: memref<16x128xbf16, #tpu.memory_space<vmem>>, %arg3: memref<8x128xbf16, #tpu.memory_space<vmem>>, %arg4: memref<128x128xbf16, #tpu.memory_space<vmem>>, %arg5: memref<1x128xf32, #tpu.memory_space<vmem>>, %arg6: memref<16x128xbf16, #tpu.memory_space<vmem>>) attributes {dimension_semantics = [#tpu.dimension_semantics<parallel>], iteration_bounds = array<i64: 1>, scalar_prefetch = 0 : i64, scratch_operands = 0 : i64, tpu.core_type = #tpu.core_type<tc>, window_params = [{transform_indices = @transform_0, window_bounds = array<i64: 16, 8>}, {transform_indices = @transform_1, window_bounds = array<i64: 16, 128>}, {pipeline_mode = #tpu.pipeline_mode<synchronous>, transform_indices = @transform_2, window_bounds = array<i64: 8, 128>}, {pipeline_mode = #tpu.pipeline_mode<synchronous>, transform_indices = @transform_3, window_bounds = array<i64: 128, 128>}, {pipeline_mode = #tpu.pipeline_mode<synchronous>, transform_indices = @transform_4, window_bounds = array<i64: 1, 128>}, {transform_indices = @transform_5, window_bounds = array<i64: 16, 128>}]} {
    %c0 = arith.constant 0 : index
    %c0_0 = arith.constant 0 : index
    %0 = vector.load %arg2[%c0, %c0_0] : memref<16x128xbf16, #tpu.memory_space<vmem>>, vector<16x128xbf16>
    %c0_1 = arith.constant 0 : index
    %c0_2 = arith.constant 0 : index
    %1 = vector.load %arg4[%c0_1, %c0_2] : memref<128x128xbf16, #tpu.memory_space<vmem>>, vector<128x128xbf16>
    %cst = arith.constant dense<0.000000e+00> : vector<16x128xf32>
    %2 = tpu.matmul %0, %1, %cst {dimension_numbers = #tpu.dot_dimension_numbers<[1], [0], [0], [1], [0, 0, 1, 1], [], []>} : vector<16x128xbf16>, vector<128x128xbf16>, vector<16x128xf32> -> vector<16x128xf32>
    %c0_3 = arith.constant 0 : index
    %c0_4 = arith.constant 0 : index
    %3 = vector.load %arg1[%c0_3, %c0_4] : memref<16x8xf32, #tpu.memory_space<vmem>>, vector<16x8xf32>
    %4 = arith.truncf %3 : vector<16x8xf32> to vector<16x8xbf16>
    %c0_5 = arith.constant 0 : index
    %c0_6 = arith.constant 0 : index
    %5 = vector.load %arg3[%c0_5, %c0_6] : memref<8x128xbf16, #tpu.memory_space<vmem>>, vector<8x128xbf16>
    %cst_7 = arith.constant dense<0.000000e+00> : vector<16x128xf32>
    %6 = tpu.matmul %4, %5, %cst_7 {dimension_numbers = #tpu.dot_dimension_numbers<[1], [0], [0], [1], [0, 0, 1, 1], [], []>} : vector<16x8xbf16>, vector<8x128xbf16>, vector<16x128xf32> -> vector<16x128xf32>
    %7 = arith.addf %2, %6 : vector<16x128xf32>
    %c0_8 = arith.constant 0 : index
    %c0_9 = arith.constant 0 : index
    %8 = vector.load %arg5[%c0_8, %c0_9] : memref<1x128xf32, #tpu.memory_space<vmem>>, vector<1x128xf32>
    %9 = vector.broadcast %8 : vector<1x128xf32> to vector<16x128xf32>
    %10 = arith.addf %7, %9 : vector<16x128xf32>
    %11 = arith.truncf %10 : vector<16x128xf32> to vector<16x128xbf16>
    %c0_10 = arith.constant 0 : index
    %c0_11 = arith.constant 0 : index
    %12 = vector.load %arg6[%c0_10, %c0_11] : memref<16x128xbf16, #tpu.memory_space<vmem>>, vector<16x128xbf16>
    tpu.vector_store %arg6[%c0_10, %c0_11], %11 {strides = array<i32>} : memref<16x128xbf16, #tpu.memory_space<vmem>>, vector<16x128xbf16>,
    return
  }
  func.func @transform_0(%arg0: i32) -> (i32, i32) {
    %c0_i32 = arith.constant 0 : i32
    %c0_i32_0 = arith.constant 0 : i32
    return %arg0, %c0_i32 : i32, i32
  }
  func.func @transform_1(%arg0: i32) -> (i32, i32) {
    %c0_i32 = arith.constant 0 : i32
    %c0_i32_0 = arith.constant 0 : i32
    return %arg0, %c0_i32 : i32, i32
  }
  func.func @transform_2(%arg0: i32) -> (i32, i32) {
    %c0_i32 = arith.constant 0 : i32
    %c0_i32_0 = arith.constant 0 : i32
    %c0_i32_1 = arith.constant 0 : i32
    return %c0_i32, %c0_i32_0 : i32, i32
  }
  func.func @transform_3(%arg0: i32) -> (i32, i32) {
    %c0_i32 = arith.constant 0 : i32
    %c0_i32_0 = arith.constant 0 : i32
    %c0_i32_1 = arith.constant 0 : i32
    return %c0_i32, %c0_i32_0 : i32, i32
  }
  func.func @transform_4(%arg0: i32) -> (i32, i32) {
    %c0_i32 = arith.constant 0 : i32
    %c0_i32_0 = arith.constant 0 : i32
    %c0_i32_1 = arith.constant 0 : i32
    return %c0_i32, %c0_i32_0 : i32, i32
  }
  func.func @transform_5(%arg0: i32) -> (i32, i32) {
    %c0_i32 = arith.constant 0 : i32
    %c0_i32_0 = arith.constant 0 : i32
    return %arg0, %c0_i32 : i32, i32
  }
}

module attributes {stable_mosaic.version = 11 : i64} {
  func.func @fps_kernel(%arg0: memref<3x8x2xf32, #tpu.memory_space<vmem>>, %arg1: memref<48xf32, #tpu.memory_space<smem>>, %arg2: memref<4xi32, #tpu.memory_space<smem>>, %arg3: memref<8x2xf32, #tpu.memory_space<vmem>>) attributes {dimension_semantics = [], scalar_prefetch = 0 : i64, scratch_operands = 1 : i64, tpu.core_type = #tpu.core_type<tc>} {
    %c0_i32 = arith.constant 0 : i32
    %c0 = arith.constant 0 : index
    %0 = memref.load %arg2[%c0] : memref<4xi32, #tpu.memory_space<smem>>
    memref.store %c0_i32, %arg2[%c0] : memref<4xi32, #tpu.memory_space<smem>>
    %1 = tpu.iota {dimensions = array<i32: 0>} : vector<8x2xi32>
    %c2_i32 = arith.constant 2 : i32
    %2 = vector.broadcast %c2_i32 : i32 to vector<8x2xi32>
    %3 = arith.muli %1, %2 : vector<8x2xi32>
    %4 = tpu.iota {dimensions = array<i32: 1>} : vector<8x2xi32>
    %5 = arith.addi %3, %4 : vector<8x2xi32>
    %c16_i32 = arith.constant 16 : i32
    %6 = vector.broadcast %c16_i32 : i32 to vector<8x2xi32>
    %7 = arith.cmpi sge, %5, %6 : vector<8x2xi32>
    %c0_i32_0 = arith.constant 0 : i32
    %8 = vector.broadcast %c0_i32_0 : i32 to vector<8x2xi32>
    %9 = arith.cmpi eq, %5, %8 : vector<8x2xi32>
    %10 = arith.ori %7, %9 : vector<8x2xi1>
    %c0_1 = arith.constant 0 : index
    %11 = memref.load %arg1[%c0_1] : memref<48xf32, #tpu.memory_space<smem>>
    %c1 = arith.constant 1 : index
    %12 = memref.load %arg1[%c1] : memref<48xf32, #tpu.memory_space<smem>>
    %c2 = arith.constant 2 : index
    %13 = memref.load %arg1[%c2] : memref<48xf32, #tpu.memory_space<smem>>
    %c0_2 = arith.constant 0 : index
    %c0_3 = arith.constant 0 : index
    %c0_4 = arith.constant 0 : index
    %14 = vector.load %arg0[%c0_2, %c0_3, %c0_4] : memref<3x8x2xf32, #tpu.memory_space<vmem>>, vector<1x8x2xf32>
    %15 = vector.shape_cast %14 : vector<1x8x2xf32> to vector<8x2xf32>
    %16 = vector.broadcast %11 : f32 to vector<8x2xf32>
    %17 = arith.subf %15, %16 : vector<8x2xf32>
    %18 = arith.mulf %17, %17 : vector<8x2xf32>
    %c1_5 = arith.constant 1 : index
    %c0_6 = arith.constant 0 : index
    %c0_7 = arith.constant 0 : index
    %19 = vector.load %arg0[%c1_5, %c0_6, %c0_7] : memref<3x8x2xf32, #tpu.memory_space<vmem>>, vector<1x8x2xf32>
    %20 = vector.shape_cast %19 : vector<1x8x2xf32> to vector<8x2xf32>
    %21 = vector.broadcast %12 : f32 to vector<8x2xf32>
    %22 = arith.subf %20, %21 : vector<8x2xf32>
    %23 = arith.mulf %22, %22 : vector<8x2xf32>
    %24 = arith.addf %18, %23 : vector<8x2xf32>
    %c2_8 = arith.constant 2 : index
    %c0_9 = arith.constant 0 : index
    %c0_10 = arith.constant 0 : index
    %25 = vector.load %arg0[%c2_8, %c0_9, %c0_10] : memref<3x8x2xf32, #tpu.memory_space<vmem>>, vector<1x8x2xf32>
    %26 = vector.shape_cast %25 : vector<1x8x2xf32> to vector<8x2xf32>
    %27 = vector.broadcast %13 : f32 to vector<8x2xf32>
    %28 = arith.subf %26, %27 : vector<8x2xf32>
    %29 = arith.mulf %28, %28 : vector<8x2xf32>
    %30 = arith.addf %24, %29 : vector<8x2xf32>
    %cst = arith.constant -1.000000e+00 : f32
    %31 = vector.broadcast %cst : f32 to vector<8x2xf32>
    %32 = arith.select %10, %31, %30 : vector<8x2xi1>, vector<8x2xf32>
    %c0_11 = arith.constant 0 : index
    %c0_12 = arith.constant 0 : index
    %33 = vector.load %arg3[%c0_11, %c0_12] : memref<8x2xf32, #tpu.memory_space<vmem>>, vector<8x2xf32>
    tpu.vector_store %arg3[%c0_11, %c0_12], %32 {strides = array<i32>} : memref<8x2xf32, #tpu.memory_space<vmem>>, vector<8x2xf32>,
    %c1_i32 = arith.constant 1 : i32
    %c3_i32 = arith.constant 3 : i32
    %34 = arith.addi %c1_i32, %c3_i32 : i32
    %c1_i32_13 = arith.constant 1 : i32
    scf.for %arg4 = %c1_i32 to %34 step %c1_i32_13  : i32 {
      %35 = tpu.iota {dimensions = array<i32: 0>} : vector<8x2xi32>
      %c2_i32_15 = arith.constant 2 : i32
      %36 = vector.broadcast %c2_i32_15 : i32 to vector<8x2xi32>
      %37 = arith.muli %35, %36 : vector<8x2xi32>
      %38 = tpu.iota {dimensions = array<i32: 1>} : vector<8x2xi32>
      %39 = arith.addi %37, %38 : vector<8x2xi32>
      %c0_16 = arith.constant 0 : index
      %c0_17 = arith.constant 0 : index
      %40 = vector.load %arg3[%c0_16, %c0_17] : memref<8x2xf32, #tpu.memory_space<vmem>>, vector<8x2xf32>
      %41 = vector.shape_cast %40 : vector<8x2xf32> to vector<1x8x2xf32>
      %cst_18 = arith.constant dense<0xFF800000> : vector<1xf32>
      %42 = vector.multi_reduction <maximumf>, %41, %cst_18 [1, 2] : vector<1x8x2xf32> to vector<1xf32>
      %43 = vector.shape_cast %42 : vector<1xf32> to vector<1x1x1xf32>
      %44 = vector.extract %43[0, 0, 0] : f32 from vector<1x1x1xf32>
      %45 = vector.broadcast %44 : f32 to vector<8x2xf32>
      %46 = arith.cmpf oge, %40, %45 : vector<8x2xf32>
      %c16_i32_19 = arith.constant 16 : i32
      %47 = vector.broadcast %c16_i32_19 : i32 to vector<8x2xi32>
      %48 = arith.select %46, %39, %47 : vector<8x2xi1>, vector<8x2xi32>
      %49 = vector.shape_cast %48 : vector<8x2xi32> to vector<1x8x2xi32>
      %cst_20 = arith.constant dense<2147483647> : vector<1xi32>
      %50 = vector.multi_reduction <minsi>, %49, %cst_20 [1, 2] : vector<1x8x2xi32> to vector<1xi32>
      %51 = vector.shape_cast %50 : vector<1xi32> to vector<1x1x1xi32>
      %52 = vector.extract %51[0, 0, 0] : i32 from vector<1x1x1xi32>
      %53 = arith.index_cast %arg4 : i32 to index
      %54 = memref.load %arg2[%53] : memref<4xi32, #tpu.memory_space<smem>>
      memref.store %52, %arg2[%53] : memref<4xi32, #tpu.memory_space<smem>>
      %55 = vector.broadcast %52 : i32 to vector<8x2xi32>
      %56 = arith.cmpi eq, %39, %55 : vector<8x2xi32>
      %c3_i32_21 = arith.constant 3 : i32
      %57 = arith.muli %c3_i32_21, %52 : i32
      %58 = arith.index_cast %57 : i32 to index
      %59 = memref.load %arg1[%58] : memref<48xf32, #tpu.memory_space<smem>>
      %c3_i32_22 = arith.constant 3 : i32
      %60 = arith.muli %c3_i32_22, %52 : i32
      %c1_i32_23 = arith.constant 1 : i32
      %61 = arith.addi %60, %c1_i32_23 : i32
      %62 = arith.index_cast %61 : i32 to index
      %63 = memref.load %arg1[%62] : memref<48xf32, #tpu.memory_space<smem>>
      %c3_i32_24 = arith.constant 3 : i32
      %64 = arith.muli %c3_i32_24, %52 : i32
      %c2_i32_25 = arith.constant 2 : i32
      %65 = arith.addi %64, %c2_i32_25 : i32
      %66 = arith.index_cast %65 : i32 to index
      %67 = memref.load %arg1[%66] : memref<48xf32, #tpu.memory_space<smem>>
      %c0_26 = arith.constant 0 : index
      %c0_27 = arith.constant 0 : index
      %c0_28 = arith.constant 0 : index
      %68 = vector.load %arg0[%c0_26, %c0_27, %c0_28] : memref<3x8x2xf32, #tpu.memory_space<vmem>>, vector<1x8x2xf32>
      %69 = vector.shape_cast %68 : vector<1x8x2xf32> to vector<8x2xf32>
      %70 = vector.broadcast %59 : f32 to vector<8x2xf32>
      %71 = arith.subf %69, %70 : vector<8x2xf32>
      %72 = arith.mulf %71, %71 : vector<8x2xf32>
      %c1_29 = arith.constant 1 : index
      %c0_30 = arith.constant 0 : index
      %c0_31 = arith.constant 0 : index
      %73 = vector.load %arg0[%c1_29, %c0_30, %c0_31] : memref<3x8x2xf32, #tpu.memory_space<vmem>>, vector<1x8x2xf32>
      %74 = vector.shape_cast %73 : vector<1x8x2xf32> to vector<8x2xf32>
      %75 = vector.broadcast %63 : f32 to vector<8x2xf32>
      %76 = arith.subf %74, %75 : vector<8x2xf32>
      %77 = arith.mulf %76, %76 : vector<8x2xf32>
      %78 = arith.addf %72, %77 : vector<8x2xf32>
      %c2_32 = arith.constant 2 : index
      %c0_33 = arith.constant 0 : index
      %c0_34 = arith.constant 0 : index
      %79 = vector.load %arg0[%c2_32, %c0_33, %c0_34] : memref<3x8x2xf32, #tpu.memory_space<vmem>>, vector<1x8x2xf32>
      %80 = vector.shape_cast %79 : vector<1x8x2xf32> to vector<8x2xf32>
      %81 = vector.broadcast %67 : f32 to vector<8x2xf32>
      %82 = arith.subf %80, %81 : vector<8x2xf32>
      %83 = arith.mulf %82, %82 : vector<8x2xf32>
      %84 = arith.addf %78, %83 : vector<8x2xf32>
      %85 = arith.minimumf %40, %84 : vector<8x2xf32>
      %cst_35 = arith.constant -1.000000e+00 : f32
      %86 = vector.broadcast %cst_35 : f32 to vector<8x2xf32>
      %87 = arith.select %56, %86, %85 : vector<8x2xi1>, vector<8x2xf32>
      %c0_36 = arith.constant 0 : index
      %c0_37 = arith.constant 0 : index
      %88 = vector.load %arg3[%c0_36, %c0_37] : memref<8x2xf32, #tpu.memory_space<vmem>>, vector<8x2xf32>
      tpu.vector_store %arg3[%c0_36, %c0_37], %87 {strides = array<i32>} : memref<8x2xf32, #tpu.memory_space<vmem>>, vector<8x2xf32>,
    }
    %c3_i32_14 = arith.constant 3 : i32
    return
  }
}

module attributes {stable_mosaic.version = 11 : i64} {
  func.func @group_kernel(%arg0: i32, %arg1: i32, %arg2: memref<4xi32, #tpu.memory_space<smem>>, %arg3: memref<48xf32, #tpu.memory_space<smem>>, %arg4: memref<16x8xf32, #tpu.memory_space<vmem>>, %arg5: memref<16x128xbf16, #tpu.memory_space<vmem>>, %arg6: memref<8x128xf32, #tpu.memory_space<vmem>>, %arg7: memref<128x128xbf16, #tpu.memory_space<vmem>>, %arg8: memref<1x128xf32, #tpu.memory_space<vmem>>, %arg9: memref<4x128xf32, #tpu.memory_space<vmem>>) attributes {dimension_semantics = [#tpu.dimension_semantics<parallel>, #tpu.dimension_semantics<arbitrary>], iteration_bounds = array<i64: 1, 1>, scalar_prefetch = 0 : i64, scratch_operands = 0 : i64, tpu.core_type = #tpu.core_type<tc>, window_params = [{transform_indices = @transform_0, window_bounds = array<i64: 4>}, {transform_indices = @transform_1, window_bounds = array<i64: 48>}, {transform_indices = @transform_2, window_bounds = array<i64: 16, 8>}, {transform_indices = @transform_3, window_bounds = array<i64: 16, 128>}, {pipeline_mode = #tpu.pipeline_mode<synchronous>, transform_indices = @transform_4, window_bounds = array<i64: 8, 128>}, {pipeline_mode = #tpu.pipeline_mode<synchronous>, transform_indices = @transform_5, window_bounds = array<i64: 128, 128>}, {pipeline_mode = #tpu.pipeline_mode<synchronous>, transform_indices = @transform_6, window_bounds = array<i64: 1, 128>}, {transform_indices = @transform_7, window_bounds = array<i64: 4, 128>}]} {
    %c0_i32 = arith.constant 0 : i32
    %0 = arith.cmpi eq, %arg1, %c0_i32 : i32
    %1 = arith.extui %0 : i1 to i32
    %c0_i32_0 = arith.constant 0 : i32
    %2 = arith.cmpi ne, %1, %c0_i32_0 : i32
    scf.if %2 {
      %cst_58 = arith.constant 0.000000e+00 : f32
      %178 = vector.broadcast %cst_58 : f32 to vector<4x128xf32>
      %c0_59 = arith.constant 0 : index
      %c0_60 = arith.constant 0 : index
      %179 = vector.load %arg9[%c0_59, %c0_60] : memref<4x128xf32, #tpu.memory_space<vmem>>, vector<4x128xf32>
      tpu.vector_store %arg9[%c0_59, %c0_60], %178 {strides = array<i32>} : memref<4x128xf32, #tpu.memory_space<vmem>>, vector<4x128xf32>,
    } else {
    }
    %c0 = arith.constant 0 : index
    %c0_1 = arith.constant 0 : index
    %3 = vector.load %arg4[%c0, %c0_1] : memref<16x8xf32, #tpu.memory_space<vmem>>, vector<16x1xf32>
    %c0_2 = arith.constant 0 : index
    %c1 = arith.constant 1 : index
    %4 = vector.load %arg4[%c0_2, %c1] : memref<16x8xf32, #tpu.memory_space<vmem>>, vector<16x1xf32>
    %c0_3 = arith.constant 0 : index
    %c2 = arith.constant 2 : index
    %5 = vector.load %arg4[%c0_3, %c2] : memref<16x8xf32, #tpu.memory_space<vmem>>, vector<16x1xf32>
    %c16_i32 = arith.constant 16 : i32
    %6 = arith.muli %arg1, %c16_i32 : i32
    %7 = tpu.iota {dimensions = array<i32: 0>} : vector<16x1xi32>
    %8 = vector.broadcast %6 : i32 to vector<16x1xi32>
    %9 = arith.addi %8, %7 : vector<16x1xi32>
    %c16_i32_4 = arith.constant 16 : i32
    %10 = vector.broadcast %c16_i32_4 : i32 to vector<16x1xi32>
    %11 = arith.cmpi slt, %9, %10 : vector<16x1xi32>
    %c0_5 = arith.constant 0 : index
    %c0_6 = arith.constant 0 : index
    %12 = vector.load %arg5[%c0_5, %c0_6] : memref<16x128xbf16, #tpu.memory_space<vmem>>, vector<16x128xbf16>
    %13 = arith.extf %12 : vector<16x128xbf16> to vector<16x128xf32>
    %c4_i32 = arith.constant 4 : i32
    %14 = arith.muli %arg0, %c4_i32 : i32
    %c0_i32_7 = arith.constant 0 : i32
    %15 = arith.addi %14, %c0_i32_7 : i32
    %16 = arith.index_cast %15 : i32 to index
    %17 = memref.load %arg2[%16] : memref<4xi32, #tpu.memory_space<smem>>
    %c3_i32 = arith.constant 3 : i32
    %18 = arith.muli %c3_i32, %17 : i32
    %19 = arith.index_cast %18 : i32 to index
    %20 = memref.load %arg3[%19] : memref<48xf32, #tpu.memory_space<smem>>
    %c3_i32_8 = arith.constant 3 : i32
    %21 = arith.muli %c3_i32_8, %17 : i32
    %c1_i32 = arith.constant 1 : i32
    %22 = arith.addi %21, %c1_i32 : i32
    %23 = arith.index_cast %22 : i32 to index
    %24 = memref.load %arg3[%23] : memref<48xf32, #tpu.memory_space<smem>>
    %c3_i32_9 = arith.constant 3 : i32
    %25 = arith.muli %c3_i32_9, %17 : i32
    %c2_i32 = arith.constant 2 : i32
    %26 = arith.addi %25, %c2_i32 : i32
    %27 = arith.index_cast %26 : i32 to index
    %28 = memref.load %arg3[%27] : memref<48xf32, #tpu.memory_space<smem>>
    %29 = vector.broadcast %20 : f32 to vector<16x1xf32>
    %30 = arith.subf %3, %29 : vector<16x1xf32>
    %31 = vector.broadcast %24 : f32 to vector<16x1xf32>
    %32 = arith.subf %4, %31 : vector<16x1xf32>
    %33 = vector.broadcast %28 : f32 to vector<16x1xf32>
    %34 = arith.subf %5, %33 : vector<16x1xf32>
    %35 = arith.mulf %30, %30 : vector<16x1xf32>
    %36 = arith.mulf %32, %32 : vector<16x1xf32>
    %37 = arith.addf %35, %36 : vector<16x1xf32>
    %38 = arith.mulf %34, %34 : vector<16x1xf32>
    %39 = arith.addf %37, %38 : vector<16x1xf32>
    %cst = arith.constant 2.250000e+00 : f32
    %40 = vector.broadcast %cst : f32 to vector<16x1xf32>
    %41 = arith.cmpf ole, %39, %40 : vector<16x1xf32>
    %42 = arith.andi %41, %11 : vector<16x1xi1>
    %cst_10 = arith.constant 1.000000e+00 : f32
    %cst_11 = arith.constant 0.000000e+00 : f32
    %43 = vector.broadcast %cst_10 : f32 to vector<16x1xf32>
    %44 = vector.broadcast %cst_11 : f32 to vector<16x1xf32>
    %45 = arith.select %42, %43, %44 : vector<16x1xi1>, vector<16x1xf32>
    %46 = vector.shape_cast %45 : vector<16x1xf32> to vector<1x16x1xf32>
    %cst_12 = arith.constant dense<0xFF800000> : vector<1xf32>
    %47 = vector.multi_reduction <maximumf>, %46, %cst_12 [1, 2] : vector<1x16x1xf32> to vector<1xf32>
    %48 = vector.shape_cast %47 : vector<1xf32> to vector<1x1x1xf32>
    %49 = vector.extract %48[0, 0, 0] : f32 from vector<1x1x1xf32>
    %cst_13 = arith.constant 0.000000e+00 : f32
    %50 = arith.cmpf ogt, %49, %cst_13 : f32
    %c4_i32_14 = arith.constant 4 : i32
    %51 = arith.cmpi slt, %15, %c4_i32_14 : i32
    %52 = arith.andi %50, %51 : i1
    %53 = arith.extui %52 : i1 to i32
    %c0_i32_15 = arith.constant 0 : i32
    %54 = arith.cmpi ne, %53, %c0_i32_15 : i32
    scf.if %54 {
      %c0_58 = arith.constant 0 : index
      %c0_59 = arith.constant 0 : index
      %178 = vector.load %arg6[%c0_58, %c0_59] : memref<8x128xf32, #tpu.memory_space<vmem>>, vector<1x128xf32>
      %179 = vector.broadcast %20 : f32 to vector<1x128xf32>
      %180 = arith.mulf %179, %178 : vector<1x128xf32>
      %c1_60 = arith.constant 1 : index
      %c0_61 = arith.constant 0 : index
      %181 = vector.load %arg6[%c1_60, %c0_61] : memref<8x128xf32, #tpu.memory_space<vmem>>, vector<1x128xf32>
      %182 = vector.broadcast %24 : f32 to vector<1x128xf32>
      %183 = arith.mulf %182, %181 : vector<1x128xf32>
      %184 = arith.addf %180, %183 : vector<1x128xf32>
      %c2_62 = arith.constant 2 : index
      %c0_63 = arith.constant 0 : index
      %185 = vector.load %arg6[%c2_62, %c0_63] : memref<8x128xf32, #tpu.memory_space<vmem>>, vector<1x128xf32>
      %186 = vector.broadcast %28 : f32 to vector<1x128xf32>
      %187 = arith.mulf %186, %185 : vector<1x128xf32>
      %188 = arith.addf %184, %187 : vector<1x128xf32>
      %189 = vector.broadcast %188 : vector<1x128xf32> to vector<16x128xf32>
      %190 = arith.addf %13, %189 : vector<16x128xf32>
      %cst_64 = arith.constant 0.000000e+00 : f32
      %191 = vector.broadcast %cst_64 : f32 to vector<16x128xf32>
      %192 = arith.maximumf %190, %191 : vector<16x128xf32>
      %193 = arith.truncf %192 : vector<16x128xf32> to vector<16x128xbf16>
      %c0_65 = arith.constant 0 : index
      %c0_66 = arith.constant 0 : index
      %194 = vector.load %arg7[%c0_65, %c0_66] : memref<128x128xbf16, #tpu.memory_space<vmem>>, vector<128x128xbf16>
      %cst_67 = arith.constant dense<0.000000e+00> : vector<16x128xf32>
      %195 = tpu.matmul %193, %194, %cst_67 {dimension_numbers = #tpu.dot_dimension_numbers<[1], [0], [0], [1], [0, 0, 1, 1], [], []>} : vector<16x128xbf16>, vector<128x128xbf16>, vector<16x128xf32> -> vector<16x128xf32>
      %c0_68 = arith.constant 0 : index
      %c0_69 = arith.constant 0 : index
      %196 = vector.load %arg8[%c0_68, %c0_69] : memref<1x128xf32, #tpu.memory_space<vmem>>, vector<1x128xf32>
      %197 = vector.broadcast %196 : vector<1x128xf32> to vector<16x128xf32>
      %198 = arith.addf %195, %197 : vector<16x128xf32>
      %cst_70 = arith.constant 0.000000e+00 : f32
      %199 = vector.broadcast %cst_70 : f32 to vector<16x128xf32>
      %200 = arith.maximumf %198, %199 : vector<16x128xf32>
      %cst_71 = arith.constant 0.000000e+00 : f32
      %201 = vector.shape_cast %42 : vector<16x1xi1> to vector<16x1xi1>
      %202 = vector.broadcast %201 : vector<16x1xi1> to vector<16x128xi1>
      %203 = vector.broadcast %cst_71 : f32 to vector<16x128xf32>
      %204 = arith.select %202, %200, %203 : vector<16x128xi1>, vector<16x128xf32>
      %c0_72 = arith.constant 0 : index
      %c0_73 = arith.constant 0 : index
      %205 = vector.load %arg9[%c0_72, %c0_73] : memref<4x128xf32, #tpu.memory_space<vmem>>, vector<1x128xf32>
      %cst_74 = arith.constant dense<0xFF800000> : vector<128xf32>
      %206 = vector.multi_reduction <maximumf>, %204, %cst_74 [0] : vector<16x128xf32> to vector<128xf32>
      %207 = vector.shape_cast %206 : vector<128xf32> to vector<1x128xf32>
      %208 = arith.maximumf %205, %207 : vector<1x128xf32>
      %c0_75 = arith.constant 0 : index
      %c0_76 = arith.constant 0 : index
      %209 = vector.load %arg9[%c0_75, %c0_76] : memref<4x128xf32, #tpu.memory_space<vmem>>, vector<1x128xf32>
      tpu.vector_store %arg9[%c0_75, %c0_76], %208 {strides = array<i32>} : memref<4x128xf32, #tpu.memory_space<vmem>>, vector<1x128xf32>,
    } else {
    }
    %c4_i32_16 = arith.constant 4 : i32
    %55 = arith.muli %arg0, %c4_i32_16 : i32
    %c1_i32_17 = arith.constant 1 : i32
    %56 = arith.addi %55, %c1_i32_17 : i32
    %57 = arith.index_cast %56 : i32 to index
    %58 = memref.load %arg2[%57] : memref<4xi32, #tpu.memory_space<smem>>
    %c3_i32_18 = arith.constant 3 : i32
    %59 = arith.muli %c3_i32_18, %58 : i32
    %60 = arith.index_cast %59 : i32 to index
    %61 = memref.load %arg3[%60] : memref<48xf32, #tpu.memory_space<smem>>
    %c3_i32_19 = arith.constant 3 : i32
    %62 = arith.muli %c3_i32_19, %58 : i32
    %c1_i32_20 = arith.constant 1 : i32
    %63 = arith.addi %62, %c1_i32_20 : i32
    %64 = arith.index_cast %63 : i32 to index
    %65 = memref.load %arg3[%64] : memref<48xf32, #tpu.memory_space<smem>>
    %c3_i32_21 = arith.constant 3 : i32
    %66 = arith.muli %c3_i32_21, %58 : i32
    %c2_i32_22 = arith.constant 2 : i32
    %67 = arith.addi %66, %c2_i32_22 : i32
    %68 = arith.index_cast %67 : i32 to index
    %69 = memref.load %arg3[%68] : memref<48xf32, #tpu.memory_space<smem>>
    %70 = vector.broadcast %61 : f32 to vector<16x1xf32>
    %71 = arith.subf %3, %70 : vector<16x1xf32>
    %72 = vector.broadcast %65 : f32 to vector<16x1xf32>
    %73 = arith.subf %4, %72 : vector<16x1xf32>
    %74 = vector.broadcast %69 : f32 to vector<16x1xf32>
    %75 = arith.subf %5, %74 : vector<16x1xf32>
    %76 = arith.mulf %71, %71 : vector<16x1xf32>
    %77 = arith.mulf %73, %73 : vector<16x1xf32>
    %78 = arith.addf %76, %77 : vector<16x1xf32>
    %79 = arith.mulf %75, %75 : vector<16x1xf32>
    %80 = arith.addf %78, %79 : vector<16x1xf32>
    %cst_23 = arith.constant 2.250000e+00 : f32
    %81 = vector.broadcast %cst_23 : f32 to vector<16x1xf32>
    %82 = arith.cmpf ole, %80, %81 : vector<16x1xf32>
    %83 = arith.andi %82, %11 : vector<16x1xi1>
    %cst_24 = arith.constant 1.000000e+00 : f32
    %cst_25 = arith.constant 0.000000e+00 : f32
    %84 = vector.broadcast %cst_24 : f32 to vector<16x1xf32>
    %85 = vector.broadcast %cst_25 : f32 to vector<16x1xf32>
    %86 = arith.select %83, %84, %85 : vector<16x1xi1>, vector<16x1xf32>
    %87 = vector.shape_cast %86 : vector<16x1xf32> to vector<1x16x1xf32>
    %cst_26 = arith.constant dense<0xFF800000> : vector<1xf32>
    %88 = vector.multi_reduction <maximumf>, %87, %cst_26 [1, 2] : vector<1x16x1xf32> to vector<1xf32>
    %89 = vector.shape_cast %88 : vector<1xf32> to vector<1x1x1xf32>
    %90 = vector.extract %89[0, 0, 0] : f32 from vector<1x1x1xf32>
    %cst_27 = arith.constant 0.000000e+00 : f32
    %91 = arith.cmpf ogt, %90, %cst_27 : f32
    %c4_i32_28 = arith.constant 4 : i32
    %92 = arith.cmpi slt, %56, %c4_i32_28 : i32
    %93 = arith.andi %91, %92 : i1
    %94 = arith.extui %93 : i1 to i32
    %c0_i32_29 = arith.constant 0 : i32
    %95 = arith.cmpi ne, %94, %c0_i32_29 : i32
    scf.if %95 {
      %c0_58 = arith.constant 0 : index
      %c0_59 = arith.constant 0 : index
      %178 = vector.load %arg6[%c0_58, %c0_59] : memref<8x128xf32, #tpu.memory_space<vmem>>, vector<1x128xf32>
      %179 = vector.broadcast %61 : f32 to vector<1x128xf32>
      %180 = arith.mulf %179, %178 : vector<1x128xf32>
      %c1_60 = arith.constant 1 : index
      %c0_61 = arith.constant 0 : index
      %181 = vector.load %arg6[%c1_60, %c0_61] : memref<8x128xf32, #tpu.memory_space<vmem>>, vector<1x128xf32>
      %182 = vector.broadcast %65 : f32 to vector<1x128xf32>
      %183 = arith.mulf %182, %181 : vector<1x128xf32>
      %184 = arith.addf %180, %183 : vector<1x128xf32>
      %c2_62 = arith.constant 2 : index
      %c0_63 = arith.constant 0 : index
      %185 = vector.load %arg6[%c2_62, %c0_63] : memref<8x128xf32, #tpu.memory_space<vmem>>, vector<1x128xf32>
      %186 = vector.broadcast %69 : f32 to vector<1x128xf32>
      %187 = arith.mulf %186, %185 : vector<1x128xf32>
      %188 = arith.addf %184, %187 : vector<1x128xf32>
      %189 = vector.broadcast %188 : vector<1x128xf32> to vector<16x128xf32>
      %190 = arith.addf %13, %189 : vector<16x128xf32>
      %cst_64 = arith.constant 0.000000e+00 : f32
      %191 = vector.broadcast %cst_64 : f32 to vector<16x128xf32>
      %192 = arith.maximumf %190, %191 : vector<16x128xf32>
      %193 = arith.truncf %192 : vector<16x128xf32> to vector<16x128xbf16>
      %c0_65 = arith.constant 0 : index
      %c0_66 = arith.constant 0 : index
      %194 = vector.load %arg7[%c0_65, %c0_66] : memref<128x128xbf16, #tpu.memory_space<vmem>>, vector<128x128xbf16>
      %cst_67 = arith.constant dense<0.000000e+00> : vector<16x128xf32>
      %195 = tpu.matmul %193, %194, %cst_67 {dimension_numbers = #tpu.dot_dimension_numbers<[1], [0], [0], [1], [0, 0, 1, 1], [], []>} : vector<16x128xbf16>, vector<128x128xbf16>, vector<16x128xf32> -> vector<16x128xf32>
      %c0_68 = arith.constant 0 : index
      %c0_69 = arith.constant 0 : index
      %196 = vector.load %arg8[%c0_68, %c0_69] : memref<1x128xf32, #tpu.memory_space<vmem>>, vector<1x128xf32>
      %197 = vector.broadcast %196 : vector<1x128xf32> to vector<16x128xf32>
      %198 = arith.addf %195, %197 : vector<16x128xf32>
      %cst_70 = arith.constant 0.000000e+00 : f32
      %199 = vector.broadcast %cst_70 : f32 to vector<16x128xf32>
      %200 = arith.maximumf %198, %199 : vector<16x128xf32>
      %cst_71 = arith.constant 0.000000e+00 : f32
      %201 = vector.shape_cast %83 : vector<16x1xi1> to vector<16x1xi1>
      %202 = vector.broadcast %201 : vector<16x1xi1> to vector<16x128xi1>
      %203 = vector.broadcast %cst_71 : f32 to vector<16x128xf32>
      %204 = arith.select %202, %200, %203 : vector<16x128xi1>, vector<16x128xf32>
      %c1_72 = arith.constant 1 : index
      %c0_73 = arith.constant 0 : index
      %205 = vector.load %arg9[%c1_72, %c0_73] : memref<4x128xf32, #tpu.memory_space<vmem>>, vector<1x128xf32>
      %cst_74 = arith.constant dense<0xFF800000> : vector<128xf32>
      %206 = vector.multi_reduction <maximumf>, %204, %cst_74 [0] : vector<16x128xf32> to vector<128xf32>
      %207 = vector.shape_cast %206 : vector<128xf32> to vector<1x128xf32>
      %208 = arith.maximumf %205, %207 : vector<1x128xf32>
      %c1_75 = arith.constant 1 : index
      %c0_76 = arith.constant 0 : index
      %209 = vector.load %arg9[%c1_75, %c0_76] : memref<4x128xf32, #tpu.memory_space<vmem>>, vector<1x128xf32>
      tpu.vector_store %arg9[%c1_75, %c0_76], %208 {strides = array<i32>} : memref<4x128xf32, #tpu.memory_space<vmem>>, vector<1x128xf32>,
    } else {
    }
    %c4_i32_30 = arith.constant 4 : i32
    %96 = arith.muli %arg0, %c4_i32_30 : i32
    %c2_i32_31 = arith.constant 2 : i32
    %97 = arith.addi %96, %c2_i32_31 : i32
    %98 = arith.index_cast %97 : i32 to index
    %99 = memref.load %arg2[%98] : memref<4xi32, #tpu.memory_space<smem>>
    %c3_i32_32 = arith.constant 3 : i32
    %100 = arith.muli %c3_i32_32, %99 : i32
    %101 = arith.index_cast %100 : i32 to index
    %102 = memref.load %arg3[%101] : memref<48xf32, #tpu.memory_space<smem>>
    %c3_i32_33 = arith.constant 3 : i32
    %103 = arith.muli %c3_i32_33, %99 : i32
    %c1_i32_34 = arith.constant 1 : i32
    %104 = arith.addi %103, %c1_i32_34 : i32
    %105 = arith.index_cast %104 : i32 to index
    %106 = memref.load %arg3[%105] : memref<48xf32, #tpu.memory_space<smem>>
    %c3_i32_35 = arith.constant 3 : i32
    %107 = arith.muli %c3_i32_35, %99 : i32
    %c2_i32_36 = arith.constant 2 : i32
    %108 = arith.addi %107, %c2_i32_36 : i32
    %109 = arith.index_cast %108 : i32 to index
    %110 = memref.load %arg3[%109] : memref<48xf32, #tpu.memory_space<smem>>
    %111 = vector.broadcast %102 : f32 to vector<16x1xf32>
    %112 = arith.subf %3, %111 : vector<16x1xf32>
    %113 = vector.broadcast %106 : f32 to vector<16x1xf32>
    %114 = arith.subf %4, %113 : vector<16x1xf32>
    %115 = vector.broadcast %110 : f32 to vector<16x1xf32>
    %116 = arith.subf %5, %115 : vector<16x1xf32>
    %117 = arith.mulf %112, %112 : vector<16x1xf32>
    %118 = arith.mulf %114, %114 : vector<16x1xf32>
    %119 = arith.addf %117, %118 : vector<16x1xf32>
    %120 = arith.mulf %116, %116 : vector<16x1xf32>
    %121 = arith.addf %119, %120 : vector<16x1xf32>
    %cst_37 = arith.constant 2.250000e+00 : f32
    %122 = vector.broadcast %cst_37 : f32 to vector<16x1xf32>
    %123 = arith.cmpf ole, %121, %122 : vector<16x1xf32>
    %124 = arith.andi %123, %11 : vector<16x1xi1>
    %cst_38 = arith.constant 1.000000e+00 : f32
    %cst_39 = arith.constant 0.000000e+00 : f32
    %125 = vector.broadcast %cst_38 : f32 to vector<16x1xf32>
    %126 = vector.broadcast %cst_39 : f32 to vector<16x1xf32>
    %127 = arith.select %124, %125, %126 : vector<16x1xi1>, vector<16x1xf32>
    %128 = vector.shape_cast %127 : vector<16x1xf32> to vector<1x16x1xf32>
    %cst_40 = arith.constant dense<0xFF800000> : vector<1xf32>
    %129 = vector.multi_reduction <maximumf>, %128, %cst_40 [1, 2] : vector<1x16x1xf32> to vector<1xf32>
    %130 = vector.shape_cast %129 : vector<1xf32> to vector<1x1x1xf32>
    %131 = vector.extract %130[0, 0, 0] : f32 from vector<1x1x1xf32>
    %cst_41 = arith.constant 0.000000e+00 : f32
    %132 = arith.cmpf ogt, %131, %cst_41 : f32
    %c4_i32_42 = arith.constant 4 : i32
    %133 = arith.cmpi slt, %97, %c4_i32_42 : i32
    %134 = arith.andi %132, %133 : i1
    %135 = arith.extui %134 : i1 to i32
    %c0_i32_43 = arith.constant 0 : i32
    %136 = arith.cmpi ne, %135, %c0_i32_43 : i32
    scf.if %136 {
      %c0_58 = arith.constant 0 : index
      %c0_59 = arith.constant 0 : index
      %178 = vector.load %arg6[%c0_58, %c0_59] : memref<8x128xf32, #tpu.memory_space<vmem>>, vector<1x128xf32>
      %179 = vector.broadcast %102 : f32 to vector<1x128xf32>
      %180 = arith.mulf %179, %178 : vector<1x128xf32>
      %c1_60 = arith.constant 1 : index
      %c0_61 = arith.constant 0 : index
      %181 = vector.load %arg6[%c1_60, %c0_61] : memref<8x128xf32, #tpu.memory_space<vmem>>, vector<1x128xf32>
      %182 = vector.broadcast %106 : f32 to vector<1x128xf32>
      %183 = arith.mulf %182, %181 : vector<1x128xf32>
      %184 = arith.addf %180, %183 : vector<1x128xf32>
      %c2_62 = arith.constant 2 : index
      %c0_63 = arith.constant 0 : index
      %185 = vector.load %arg6[%c2_62, %c0_63] : memref<8x128xf32, #tpu.memory_space<vmem>>, vector<1x128xf32>
      %186 = vector.broadcast %110 : f32 to vector<1x128xf32>
      %187 = arith.mulf %186, %185 : vector<1x128xf32>
      %188 = arith.addf %184, %187 : vector<1x128xf32>
      %189 = vector.broadcast %188 : vector<1x128xf32> to vector<16x128xf32>
      %190 = arith.addf %13, %189 : vector<16x128xf32>
      %cst_64 = arith.constant 0.000000e+00 : f32
      %191 = vector.broadcast %cst_64 : f32 to vector<16x128xf32>
      %192 = arith.maximumf %190, %191 : vector<16x128xf32>
      %193 = arith.truncf %192 : vector<16x128xf32> to vector<16x128xbf16>
      %c0_65 = arith.constant 0 : index
      %c0_66 = arith.constant 0 : index
      %194 = vector.load %arg7[%c0_65, %c0_66] : memref<128x128xbf16, #tpu.memory_space<vmem>>, vector<128x128xbf16>
      %cst_67 = arith.constant dense<0.000000e+00> : vector<16x128xf32>
      %195 = tpu.matmul %193, %194, %cst_67 {dimension_numbers = #tpu.dot_dimension_numbers<[1], [0], [0], [1], [0, 0, 1, 1], [], []>} : vector<16x128xbf16>, vector<128x128xbf16>, vector<16x128xf32> -> vector<16x128xf32>
      %c0_68 = arith.constant 0 : index
      %c0_69 = arith.constant 0 : index
      %196 = vector.load %arg8[%c0_68, %c0_69] : memref<1x128xf32, #tpu.memory_space<vmem>>, vector<1x128xf32>
      %197 = vector.broadcast %196 : vector<1x128xf32> to vector<16x128xf32>
      %198 = arith.addf %195, %197 : vector<16x128xf32>
      %cst_70 = arith.constant 0.000000e+00 : f32
      %199 = vector.broadcast %cst_70 : f32 to vector<16x128xf32>
      %200 = arith.maximumf %198, %199 : vector<16x128xf32>
      %cst_71 = arith.constant 0.000000e+00 : f32
      %201 = vector.shape_cast %124 : vector<16x1xi1> to vector<16x1xi1>
      %202 = vector.broadcast %201 : vector<16x1xi1> to vector<16x128xi1>
      %203 = vector.broadcast %cst_71 : f32 to vector<16x128xf32>
      %204 = arith.select %202, %200, %203 : vector<16x128xi1>, vector<16x128xf32>
      %c2_72 = arith.constant 2 : index
      %c0_73 = arith.constant 0 : index
      %205 = vector.load %arg9[%c2_72, %c0_73] : memref<4x128xf32, #tpu.memory_space<vmem>>, vector<1x128xf32>
      %cst_74 = arith.constant dense<0xFF800000> : vector<128xf32>
      %206 = vector.multi_reduction <maximumf>, %204, %cst_74 [0] : vector<16x128xf32> to vector<128xf32>
      %207 = vector.shape_cast %206 : vector<128xf32> to vector<1x128xf32>
      %208 = arith.maximumf %205, %207 : vector<1x128xf32>
      %c2_75 = arith.constant 2 : index
      %c0_76 = arith.constant 0 : index
      %209 = vector.load %arg9[%c2_75, %c0_76] : memref<4x128xf32, #tpu.memory_space<vmem>>, vector<1x128xf32>
      tpu.vector_store %arg9[%c2_75, %c0_76], %208 {strides = array<i32>} : memref<4x128xf32, #tpu.memory_space<vmem>>, vector<1x128xf32>,
    } else {
    }
    %c4_i32_44 = arith.constant 4 : i32
    %137 = arith.muli %arg0, %c4_i32_44 : i32
    %c3_i32_45 = arith.constant 3 : i32
    %138 = arith.addi %137, %c3_i32_45 : i32
    %139 = arith.index_cast %138 : i32 to index
    %140 = memref.load %arg2[%139] : memref<4xi32, #tpu.memory_space<smem>>
    %c3_i32_46 = arith.constant 3 : i32
    %141 = arith.muli %c3_i32_46, %140 : i32
    %142 = arith.index_cast %141 : i32 to index
    %143 = memref.load %arg3[%142] : memref<48xf32, #tpu.memory_space<smem>>
    %c3_i32_47 = arith.constant 3 : i32
    %144 = arith.muli %c3_i32_47, %140 : i32
    %c1_i32_48 = arith.constant 1 : i32
    %145 = arith.addi %144, %c1_i32_48 : i32
    %146 = arith.index_cast %145 : i32 to index
    %147 = memref.load %arg3[%146] : memref<48xf32, #tpu.memory_space<smem>>
    %c3_i32_49 = arith.constant 3 : i32
    %148 = arith.muli %c3_i32_49, %140 : i32
    %c2_i32_50 = arith.constant 2 : i32
    %149 = arith.addi %148, %c2_i32_50 : i32
    %150 = arith.index_cast %149 : i32 to index
    %151 = memref.load %arg3[%150] : memref<48xf32, #tpu.memory_space<smem>>
    %152 = vector.broadcast %143 : f32 to vector<16x1xf32>
    %153 = arith.subf %3, %152 : vector<16x1xf32>
    %154 = vector.broadcast %147 : f32 to vector<16x1xf32>
    %155 = arith.subf %4, %154 : vector<16x1xf32>
    %156 = vector.broadcast %151 : f32 to vector<16x1xf32>
    %157 = arith.subf %5, %156 : vector<16x1xf32>
    %158 = arith.mulf %153, %153 : vector<16x1xf32>
    %159 = arith.mulf %155, %155 : vector<16x1xf32>
    %160 = arith.addf %158, %159 : vector<16x1xf32>
    %161 = arith.mulf %157, %157 : vector<16x1xf32>
    %162 = arith.addf %160, %161 : vector<16x1xf32>
    %cst_51 = arith.constant 2.250000e+00 : f32
    %163 = vector.broadcast %cst_51 : f32 to vector<16x1xf32>
    %164 = arith.cmpf ole, %162, %163 : vector<16x1xf32>
    %165 = arith.andi %164, %11 : vector<16x1xi1>
    %cst_52 = arith.constant 1.000000e+00 : f32
    %cst_53 = arith.constant 0.000000e+00 : f32
    %166 = vector.broadcast %cst_52 : f32 to vector<16x1xf32>
    %167 = vector.broadcast %cst_53 : f32 to vector<16x1xf32>
    %168 = arith.select %165, %166, %167 : vector<16x1xi1>, vector<16x1xf32>
    %169 = vector.shape_cast %168 : vector<16x1xf32> to vector<1x16x1xf32>
    %cst_54 = arith.constant dense<0xFF800000> : vector<1xf32>
    %170 = vector.multi_reduction <maximumf>, %169, %cst_54 [1, 2] : vector<1x16x1xf32> to vector<1xf32>
    %171 = vector.shape_cast %170 : vector<1xf32> to vector<1x1x1xf32>
    %172 = vector.extract %171[0, 0, 0] : f32 from vector<1x1x1xf32>
    %cst_55 = arith.constant 0.000000e+00 : f32
    %173 = arith.cmpf ogt, %172, %cst_55 : f32
    %c4_i32_56 = arith.constant 4 : i32
    %174 = arith.cmpi slt, %138, %c4_i32_56 : i32
    %175 = arith.andi %173, %174 : i1
    %176 = arith.extui %175 : i1 to i32
    %c0_i32_57 = arith.constant 0 : i32
    %177 = arith.cmpi ne, %176, %c0_i32_57 : i32
    scf.if %177 {
      %c0_58 = arith.constant 0 : index
      %c0_59 = arith.constant 0 : index
      %178 = vector.load %arg6[%c0_58, %c0_59] : memref<8x128xf32, #tpu.memory_space<vmem>>, vector<1x128xf32>
      %179 = vector.broadcast %143 : f32 to vector<1x128xf32>
      %180 = arith.mulf %179, %178 : vector<1x128xf32>
      %c1_60 = arith.constant 1 : index
      %c0_61 = arith.constant 0 : index
      %181 = vector.load %arg6[%c1_60, %c0_61] : memref<8x128xf32, #tpu.memory_space<vmem>>, vector<1x128xf32>
      %182 = vector.broadcast %147 : f32 to vector<1x128xf32>
      %183 = arith.mulf %182, %181 : vector<1x128xf32>
      %184 = arith.addf %180, %183 : vector<1x128xf32>
      %c2_62 = arith.constant 2 : index
      %c0_63 = arith.constant 0 : index
      %185 = vector.load %arg6[%c2_62, %c0_63] : memref<8x128xf32, #tpu.memory_space<vmem>>, vector<1x128xf32>
      %186 = vector.broadcast %151 : f32 to vector<1x128xf32>
      %187 = arith.mulf %186, %185 : vector<1x128xf32>
      %188 = arith.addf %184, %187 : vector<1x128xf32>
      %189 = vector.broadcast %188 : vector<1x128xf32> to vector<16x128xf32>
      %190 = arith.addf %13, %189 : vector<16x128xf32>
      %cst_64 = arith.constant 0.000000e+00 : f32
      %191 = vector.broadcast %cst_64 : f32 to vector<16x128xf32>
      %192 = arith.maximumf %190, %191 : vector<16x128xf32>
      %193 = arith.truncf %192 : vector<16x128xf32> to vector<16x128xbf16>
      %c0_65 = arith.constant 0 : index
      %c0_66 = arith.constant 0 : index
      %194 = vector.load %arg7[%c0_65, %c0_66] : memref<128x128xbf16, #tpu.memory_space<vmem>>, vector<128x128xbf16>
      %cst_67 = arith.constant dense<0.000000e+00> : vector<16x128xf32>
      %195 = tpu.matmul %193, %194, %cst_67 {dimension_numbers = #tpu.dot_dimension_numbers<[1], [0], [0], [1], [0, 0, 1, 1], [], []>} : vector<16x128xbf16>, vector<128x128xbf16>, vector<16x128xf32> -> vector<16x128xf32>
      %c0_68 = arith.constant 0 : index
      %c0_69 = arith.constant 0 : index
      %196 = vector.load %arg8[%c0_68, %c0_69] : memref<1x128xf32, #tpu.memory_space<vmem>>, vector<1x128xf32>
      %197 = vector.broadcast %196 : vector<1x128xf32> to vector<16x128xf32>
      %198 = arith.addf %195, %197 : vector<16x128xf32>
      %cst_70 = arith.constant 0.000000e+00 : f32
      %199 = vector.broadcast %cst_70 : f32 to vector<16x128xf32>
      %200 = arith.maximumf %198, %199 : vector<16x128xf32>
      %cst_71 = arith.constant 0.000000e+00 : f32
      %201 = vector.shape_cast %165 : vector<16x1xi1> to vector<16x1xi1>
      %202 = vector.broadcast %201 : vector<16x1xi1> to vector<16x128xi1>
      %203 = vector.broadcast %cst_71 : f32 to vector<16x128xf32>
      %204 = arith.select %202, %200, %203 : vector<16x128xi1>, vector<16x128xf32>
      %c3 = arith.constant 3 : index
      %c0_72 = arith.constant 0 : index
      %205 = vector.load %arg9[%c3, %c0_72] : memref<4x128xf32, #tpu.memory_space<vmem>>, vector<1x128xf32>
      %cst_73 = arith.constant dense<0xFF800000> : vector<128xf32>
      %206 = vector.multi_reduction <maximumf>, %204, %cst_73 [0] : vector<16x128xf32> to vector<128xf32>
      %207 = vector.shape_cast %206 : vector<128xf32> to vector<1x128xf32>
      %208 = arith.maximumf %205, %207 : vector<1x128xf32>
      %c3_74 = arith.constant 3 : index
      %c0_75 = arith.constant 0 : index
      %209 = vector.load %arg9[%c3_74, %c0_75] : memref<4x128xf32, #tpu.memory_space<vmem>>, vector<1x128xf32>
      tpu.vector_store %arg9[%c3_74, %c0_75], %208 {strides = array<i32>} : memref<4x128xf32, #tpu.memory_space<vmem>>, vector<1x128xf32>,
    } else {
    }
    return
  }
  func.func @transform_0(%arg0: i32, %arg1: i32) -> i32 {
    %c0_i32 = arith.constant 0 : i32
    %c0_i32_0 = arith.constant 0 : i32
    return %c0_i32 : i32
  }
  func.func @transform_1(%arg0: i32, %arg1: i32) -> i32 {
    %c0_i32 = arith.constant 0 : i32
    %c0_i32_0 = arith.constant 0 : i32
    return %c0_i32 : i32
  }
  func.func @transform_2(%arg0: i32, %arg1: i32) -> (i32, i32) {
    %c0_i32 = arith.constant 0 : i32
    %c0_i32_0 = arith.constant 0 : i32
    return %arg1, %c0_i32 : i32, i32
  }
  func.func @transform_3(%arg0: i32, %arg1: i32) -> (i32, i32) {
    %c0_i32 = arith.constant 0 : i32
    %c0_i32_0 = arith.constant 0 : i32
    return %arg1, %c0_i32 : i32, i32
  }
  func.func @transform_4(%arg0: i32, %arg1: i32) -> (i32, i32) {
    %c0_i32 = arith.constant 0 : i32
    %c0_i32_0 = arith.constant 0 : i32
    %c0_i32_1 = arith.constant 0 : i32
    return %c0_i32, %c0_i32_0 : i32, i32
  }
  func.func @transform_5(%arg0: i32, %arg1: i32) -> (i32, i32) {
    %c0_i32 = arith.constant 0 : i32
    %c0_i32_0 = arith.constant 0 : i32
    %c0_i32_1 = arith.constant 0 : i32
    return %c0_i32, %c0_i32_0 : i32, i32
  }
  func.func @transform_6(%arg0: i32, %arg1: i32) -> (i32, i32) {
    %c0_i32 = arith.constant 0 : i32
    %c0_i32_0 = arith.constant 0 : i32
    %c0_i32_1 = arith.constant 0 : i32
    return %c0_i32, %c0_i32_0 : i32, i32
  }
  func.func @transform_7(%arg0: i32, %arg1: i32) -> (i32, i32) {
    %c0_i32 = arith.constant 0 : i32
    %c0_i32_0 = arith.constant 0 : i32
    return %arg0, %c0_i32 : i32, i32
  }
}

module attributes {stable_mosaic.version = 11 : i64} {
  func.func @head_kernel(%arg0: memref<4x128xf32, #tpu.memory_space<vmem>>, %arg1: memref<128x128xbf16, #tpu.memory_space<vmem>>, %arg2: memref<1x128xf32, #tpu.memory_space<vmem>>, %arg3: memref<128x128xbf16, #tpu.memory_space<vmem>>, %arg4: memref<1x128xf32, #tpu.memory_space<vmem>>, %arg5: memref<128x128xbf16, #tpu.memory_space<vmem>>, %arg6: memref<1x128xf32, #tpu.memory_space<vmem>>, %arg7: memref<4x128xf32, #tpu.memory_space<vmem>>, %arg8: memref<4x1xi32, #tpu.memory_space<vmem>>) attributes {dimension_semantics = [], scalar_prefetch = 0 : i64, scratch_operands = 0 : i64, tpu.core_type = #tpu.core_type<tc>} {
    %c0 = arith.constant 0 : index
    %c0_0 = arith.constant 0 : index
    %0 = vector.load %arg0[%c0, %c0_0] : memref<4x128xf32, #tpu.memory_space<vmem>>, vector<4x128xf32>
    %1 = arith.truncf %0 : vector<4x128xf32> to vector<4x128xbf16>
    %c0_1 = arith.constant 0 : index
    %c0_2 = arith.constant 0 : index
    %2 = vector.load %arg1[%c0_1, %c0_2] : memref<128x128xbf16, #tpu.memory_space<vmem>>, vector<128x128xbf16>
    %cst = arith.constant dense<0.000000e+00> : vector<4x128xf32>
    %3 = tpu.matmul %1, %2, %cst {dimension_numbers = #tpu.dot_dimension_numbers<[1], [0], [0], [1], [0, 0, 1, 1], [], []>} : vector<4x128xbf16>, vector<128x128xbf16>, vector<4x128xf32> -> vector<4x128xf32>
    %c0_3 = arith.constant 0 : index
    %c0_4 = arith.constant 0 : index
    %4 = vector.load %arg2[%c0_3, %c0_4] : memref<1x128xf32, #tpu.memory_space<vmem>>, vector<1x128xf32>
    %5 = vector.broadcast %4 : vector<1x128xf32> to vector<4x128xf32>
    %6 = arith.addf %3, %5 : vector<4x128xf32>
    %cst_5 = arith.constant 0.000000e+00 : f32
    %7 = vector.broadcast %cst_5 : f32 to vector<4x128xf32>
    %8 = arith.maximumf %6, %7 : vector<4x128xf32>
    %9 = arith.truncf %8 : vector<4x128xf32> to vector<4x128xbf16>
    %c0_6 = arith.constant 0 : index
    %c0_7 = arith.constant 0 : index
    %10 = vector.load %arg3[%c0_6, %c0_7] : memref<128x128xbf16, #tpu.memory_space<vmem>>, vector<128x128xbf16>
    %cst_8 = arith.constant dense<0.000000e+00> : vector<4x128xf32>
    %11 = tpu.matmul %9, %10, %cst_8 {dimension_numbers = #tpu.dot_dimension_numbers<[1], [0], [0], [1], [0, 0, 1, 1], [], []>} : vector<4x128xbf16>, vector<128x128xbf16>, vector<4x128xf32> -> vector<4x128xf32>
    %c0_9 = arith.constant 0 : index
    %c0_10 = arith.constant 0 : index
    %12 = vector.load %arg4[%c0_9, %c0_10] : memref<1x128xf32, #tpu.memory_space<vmem>>, vector<1x128xf32>
    %13 = vector.broadcast %12 : vector<1x128xf32> to vector<4x128xf32>
    %14 = arith.addf %11, %13 : vector<4x128xf32>
    %cst_11 = arith.constant 0.000000e+00 : f32
    %15 = vector.broadcast %cst_11 : f32 to vector<4x128xf32>
    %16 = arith.maximumf %14, %15 : vector<4x128xf32>
    %17 = arith.truncf %16 : vector<4x128xf32> to vector<4x128xbf16>
    %c0_12 = arith.constant 0 : index
    %c0_13 = arith.constant 0 : index
    %18 = vector.load %arg5[%c0_12, %c0_13] : memref<128x128xbf16, #tpu.memory_space<vmem>>, vector<128x128xbf16>
    %cst_14 = arith.constant dense<0.000000e+00> : vector<4x128xf32>
    %19 = tpu.matmul %17, %18, %cst_14 {dimension_numbers = #tpu.dot_dimension_numbers<[1], [0], [0], [1], [0, 0, 1, 1], [], []>} : vector<4x128xbf16>, vector<128x128xbf16>, vector<4x128xf32> -> vector<4x128xf32>
    %c0_15 = arith.constant 0 : index
    %c0_16 = arith.constant 0 : index
    %20 = vector.load %arg6[%c0_15, %c0_16] : memref<1x128xf32, #tpu.memory_space<vmem>>, vector<1x128xf32>
    %21 = vector.broadcast %20 : vector<1x128xf32> to vector<4x128xf32>
    %22 = arith.addf %19, %21 : vector<4x128xf32>
    %cst_17 = arith.constant 0.000000e+00 : f32
    %23 = vector.broadcast %cst_17 : f32 to vector<4x128xf32>
    %24 = arith.subf %23, %22 : vector<4x128xf32>
    %25 = math.exp %24 : vector<4x128xf32>
    %cst_18 = arith.constant 1.000000e+00 : f32
    %26 = vector.broadcast %cst_18 : f32 to vector<4x128xf32>
    %27 = arith.addf %26, %25 : vector<4x128xf32>
    %cst_19 = arith.constant 1.000000e+00 : f32
    %28 = vector.broadcast %cst_19 : f32 to vector<4x128xf32>
    %29 = arith.divf %28, %27 : vector<4x128xf32>
    %c0_20 = arith.constant 0 : index
    %c0_21 = arith.constant 0 : index
    %30 = vector.load %arg7[%c0_20, %c0_21] : memref<4x128xf32, #tpu.memory_space<vmem>>, vector<4x128xf32>
    tpu.vector_store %arg7[%c0_20, %c0_21], %29 {strides = array<i32>} : memref<4x128xf32, #tpu.memory_space<vmem>>, vector<4x128xf32>,
    %31 = vector.extract_strided_slice %29 {offsets = [0, 0], sizes = [4, 1], strides = [1, 1]} : vector<4x128xf32> to vector<4x1xf32>
    %32 = vector.extract_strided_slice %29 {offsets = [0, 1], sizes = [4, 3], strides = [1, 1]} : vector<4x128xf32> to vector<4x3xf32>
    %33 = vector.extract_strided_slice %29 {offsets = [0, 4], sizes = [4, 3], strides = [1, 1]} : vector<4x128xf32> to vector<4x3xf32>
    %34 = arith.minimumf %32, %33 : vector<4x3xf32>
    %35 = vector.extract_strided_slice %29 {offsets = [0, 1], sizes = [4, 3], strides = [1, 1]} : vector<4x128xf32> to vector<4x3xf32>
    %36 = vector.extract_strided_slice %29 {offsets = [0, 4], sizes = [4, 3], strides = [1, 1]} : vector<4x128xf32> to vector<4x3xf32>
    %37 = arith.maximumf %35, %36 : vector<4x3xf32>
    %38 = vector.extract_strided_slice %37 {offsets = [0, 0], sizes = [4, 1], strides = [1, 1]} : vector<4x3xf32> to vector<4x1xf32>
    %39 = vector.extract_strided_slice %34 {offsets = [0, 0], sizes = [4, 1], strides = [1, 1]} : vector<4x3xf32> to vector<4x1xf32>
    %40 = arith.subf %38, %39 : vector<4x1xf32>
    %41 = vector.extract_strided_slice %37 {offsets = [0, 1], sizes = [4, 1], strides = [1, 1]} : vector<4x3xf32> to vector<4x1xf32>
    %42 = vector.extract_strided_slice %34 {offsets = [0, 1], sizes = [4, 1], strides = [1, 1]} : vector<4x3xf32> to vector<4x1xf32>
    %43 = arith.subf %41, %42 : vector<4x1xf32>
    %44 = arith.mulf %40, %43 : vector<4x1xf32>
    %45 = vector.extract_strided_slice %37 {offsets = [0, 2], sizes = [4, 1], strides = [1, 1]} : vector<4x3xf32> to vector<4x1xf32>
    %46 = vector.extract_strided_slice %34 {offsets = [0, 2], sizes = [4, 1], strides = [1, 1]} : vector<4x3xf32> to vector<4x1xf32>
    %47 = arith.subf %45, %46 : vector<4x1xf32>
    %48 = arith.mulf %44, %47 : vector<4x1xf32>
    %49 = tpu.iota {dimensions = array<i32: 0>} : vector<4x1xi32>
    %cst_22 = arith.constant 1.000000e+00 : f32
    %50 = vector.broadcast %cst_22 : f32 to vector<4x1xf32>
    %cst_23 = arith.constant 0.000000e+00 : f32
    %51 = vector.broadcast %cst_23 : f32 to vector<4x1xf32>
    %c0_i32 = arith.constant 0 : i32
    %c4_i32 = arith.constant 4 : i32
    %52 = arith.addi %c0_i32, %c4_i32 : i32
    %c1_i32 = arith.constant 1 : i32
    %53:2 = scf.for %arg9 = %c0_i32 to %52 step %c1_i32 iter_args(%arg10 = %50, %arg11 = %51) -> (vector<4x1xf32>, vector<4x1xf32>)  : i32 {
      %cst_27 = arith.constant 5.000000e-01 : f32
      %58 = vector.broadcast %cst_27 : f32 to vector<4x1xf32>
      %59 = arith.cmpf ogt, %arg10, %58 : vector<4x1xf32>
      %cst_28 = arith.constant -1.000000e+00 : f32
      %60 = vector.broadcast %cst_28 : f32 to vector<4x1xf32>
      %61 = arith.select %59, %31, %60 : vector<4x1xi1>, vector<4x1xf32>
      %62 = vector.shape_cast %61 : vector<4x1xf32> to vector<1x4x1xf32>
      %cst_29 = arith.constant dense<0xFF800000> : vector<1xf32>
      %63 = vector.multi_reduction <maximumf>, %62, %cst_29 [1, 2] : vector<1x4x1xf32> to vector<1xf32>
      %64 = vector.shape_cast %63 : vector<1xf32> to vector<1x1x1xf32>
      %65 = vector.extract %64[0, 0, 0] : f32 from vector<1x1x1xf32>
      %cst_30 = arith.constant 0.000000e+00 : f32
      %66 = arith.cmpf oge, %65, %cst_30 : f32
      %67 = vector.broadcast %65 : f32 to vector<4x1xf32>
      %68 = arith.cmpf oge, %61, %67 : vector<4x1xf32>
      %c4_i32_31 = arith.constant 4 : i32
      %69 = vector.broadcast %c4_i32_31 : i32 to vector<4x1xi32>
      %70 = arith.select %68, %49, %69 : vector<4x1xi1>, vector<4x1xi32>
      %71 = vector.shape_cast %70 : vector<4x1xi32> to vector<1x4x1xi32>
      %cst_32 = arith.constant dense<2147483647> : vector<1xi32>
      %72 = vector.multi_reduction <minsi>, %71, %cst_32 [1, 2] : vector<1x4x1xi32> to vector<1xi32>
      %73 = vector.shape_cast %72 : vector<1xi32> to vector<1x1x1xi32>
      %74 = vector.extract %73[0, 0, 0] : i32 from vector<1x1x1xi32>
      %75 = vector.broadcast %74 : i32 to vector<4x1xi32>
      %76 = arith.cmpi eq, %49, %75 : vector<4x1xi32>
      %77 = arith.extui %76 : vector<4x1xi1> to vector<4x1xi32>
      %78 = arith.sitofp %77 : vector<4x1xi32> to vector<4x1xf32>
      %79 = vector.broadcast %78 : vector<4x1xf32> to vector<4x3xf32>
      %80 = arith.mulf %79, %34 : vector<4x3xf32>
      %cst_33 = arith.constant dense<0.000000e+00> : vector<3xf32>
      %81 = vector.multi_reduction <add>, %80, %cst_33 [0] : vector<4x3xf32> to vector<3xf32>
      %82 = vector.shape_cast %81 : vector<3xf32> to vector<1x3xf32>
      %83 = vector.broadcast %78 : vector<4x1xf32> to vector<4x3xf32>
      %84 = arith.mulf %83, %37 : vector<4x3xf32>
      %cst_34 = arith.constant dense<0.000000e+00> : vector<3xf32>
      %85 = vector.multi_reduction <add>, %84, %cst_34 [0] : vector<4x3xf32> to vector<3xf32>
      %86 = vector.shape_cast %85 : vector<3xf32> to vector<1x3xf32>
      %87 = arith.mulf %78, %48 : vector<4x1xf32>
      %88 = vector.shape_cast %87 : vector<4x1xf32> to vector<1x4x1xf32>
      %cst_35 = arith.constant dense<0.000000e+00> : vector<1xf32>
      %89 = vector.multi_reduction <add>, %88, %cst_35 [1, 2] : vector<1x4x1xf32> to vector<1xf32>
      %90 = vector.shape_cast %89 : vector<1xf32> to vector<1x1x1xf32>
      %91 = vector.extract %90[0, 0, 0] : f32 from vector<1x1x1xf32>
      %92 = vector.broadcast %86 : vector<1x3xf32> to vector<4x3xf32>
      %93 = arith.minimumf %37, %92 : vector<4x3xf32>
      %94 = vector.broadcast %82 : vector<1x3xf32> to vector<4x3xf32>
      %95 = arith.maximumf %34, %94 : vector<4x3xf32>
      %96 = arith.subf %93, %95 : vector<4x3xf32>
      %cst_36 = arith.constant 0.000000e+00 : f32
      %97 = vector.broadcast %cst_36 : f32 to vector<4x3xf32>
      %98 = arith.maximumf %96, %97 : vector<4x3xf32>
      %99 = vector.extract_strided_slice %98 {offsets = [0, 0], sizes = [4, 1], strides = [1, 1]} : vector<4x3xf32> to vector<4x1xf32>
      %100 = vector.extract_strided_slice %98 {offsets = [0, 1], sizes = [4, 1], strides = [1, 1]} : vector<4x3xf32> to vector<4x1xf32>
      %101 = arith.mulf %99, %100 : vector<4x1xf32>
      %102 = vector.extract_strided_slice %98 {offsets = [0, 2], sizes = [4, 1], strides = [1, 1]} : vector<4x3xf32> to vector<4x1xf32>
      %103 = arith.mulf %101, %102 : vector<4x1xf32>
      %104 = vector.broadcast %91 : f32 to vector<4x1xf32>
      %105 = arith.addf %48, %104 : vector<4x1xf32>
      %106 = arith.subf %105, %103 : vector<4x1xf32>
      %cst_37 = arith.constant 9.99999971E-10 : f32
      %107 = vector.broadcast %cst_37 : f32 to vector<4x1xf32>
      %108 = arith.addf %106, %107 : vector<4x1xf32>
      %109 = arith.divf %103, %108 : vector<4x1xf32>
      %110 = vector.broadcast %66 : i1 to vector<4x1xi1>
      %111 = arith.andi %110, %76 : vector<4x1xi1>
      %cst_38 = arith.constant 1.000000e+00 : f32
      %112 = vector.broadcast %cst_38 : f32 to vector<4x1xf32>
      %113 = arith.select %111, %112, %arg11 : vector<4x1xi1>, vector<4x1xf32>
      %cst_39 = arith.constant 2.500000e-01 : f32
      %114 = vector.broadcast %cst_39 : f32 to vector<4x1xf32>
      %115 = arith.cmpf ogt, %109, %114 : vector<4x1xf32>
      %116 = arith.ori %115, %76 : vector<4x1xi1>
      %117 = vector.broadcast %66 : i1 to vector<4x1xi1>
      %118 = arith.andi %117, %116 : vector<4x1xi1>
      %cst_40 = arith.constant 0.000000e+00 : f32
      %119 = vector.broadcast %cst_40 : f32 to vector<4x1xf32>
      %120 = arith.select %118, %119, %arg10 : vector<4x1xi1>, vector<4x1xf32>
      scf.yield %120, %113 : vector<4x1xf32>, vector<4x1xf32>
    }
    %cst_24 = arith.constant 5.000000e-01 : f32
    %54 = vector.broadcast %cst_24 : f32 to vector<4x1xf32>
    %55 = arith.cmpf ogt, %53#1, %54 : vector<4x1xf32>
    %56 = arith.extui %55 : vector<4x1xi1> to vector<4x1xi32>
    %c0_25 = arith.constant 0 : index
    %c0_26 = arith.constant 0 : index
    %57 = vector.load %arg8[%c0_25, %c0_26] : memref<4x1xi32, #tpu.memory_space<vmem>>, vector<4x1xi32>
    tpu.vector_store %arg8[%c0_25, %c0_26], %56 {strides = array<i32>} : memref<4x1xi32, #tpu.memory_space<vmem>>, vector<4x1xi32>,
    return
  }
}

</mosaic_0001>

<bundles_post_ra>
// kernel: detection_head_forward.5
= control target key start
LH: loop header
LB: loop body
LE: loop exit
PB: predicated region body
PF: predicated region fallthrough
CT: control target
= control target key end

     0   :  { %7 = vsyncpa [#allocation4], 0  ;;  %s275_s0 = inlined_call_operand.vmem [shape: f32[3,8,2], index: 0, kind: input, shape index: {}]   ;;  %s276_s1 = inlined_call_operand.vmem [shape: f32[48], index: 1, kind: input, shape index: {}]   ;;  %s277_s2 = inlined_call_operand.vmem [shape: s32[4], index: 2, kind: output, shape index: {}]  }
   0x1   :  { %8 = vsyncpa [#allocation5], 0  ;;  %s17_s11 = sshll.u32 %s276_s1, 4  ;;  %s18_s11 = int_to_ptr.vmem [resolvable:$true] %s17_s11 }
   0x2   :  { %s173_s12 = scalar_lea.vmem %s18_s11, 16  ;;  %p178_p1 = scmp.lt.s32.totalorder %s18_s11, %s18_s11 }
   0x3   :  { %p174_p0 = scmp.ne.s32.totalorder %s18_s11, %s173_s12  ;;  %p179_p2 = scmp.lt.s32.totalorder %s173_s12, %s173_s12 }
   0x5   :  { %p180_p3 = por %p179_p2, %p178_p1 }
   0x7   :  { %p181_p4 = pnand %p180_p3, %p174_p0 }
   0x9   :  { %184 = shalt.err (!%p181_p4)
}
   0xa   :  { %s209_s13 = smov [#allocation3]  }
   0xb   :  { %20 = dma.vmem_to_smem %s18_s11, 16, %s209_s13, [#allocation4]  }
   0xc   :  { %201 = dma.done.wait [#allocation4], 16  }
   0xd   :  { %202 = vsyncadd [#allocation4], 4294967280 }
   0xe   :  { %24 = sfence }
   0xf   :  { %v27_v0 = vlaneseq  ;;  %s36_s14 = sld [smem:[#allocation3]]  ;;  %s210_s15 = smov 0   ;;  %v39_v4 = vld [vmem:[%s275_s0] sm:$0xff]  ;;  %v154_v6 = vld [vmem:[%s275_s0 + $0x8] sm:$0xff]  ;;  %v155_v9 = vld [vmem:[%s275_s0 + $0x10] sm:$0xff]  ;;  %vm56_vm3 = vcmask 15360  }
  0x10   :  { %26 = sst [smem:[#allocation6]] %s210_s15  ;;  %s244_s23 = smov 1  }
  0x11   :  { %v28_v1 = vshrl.u32 %v27_v0, 7  ;;  %s152_s16 = sld [smem:[#allocation3 + $0x1]]  ;;  %v31_v2 = vand.u32 127, %v27_v0 }
  0x12   :  { %s153_s1 = sld [smem:[#allocation3 + $0x2]] }
  0x13   :  { %v29_v3 = vmul.u32 2, %v28_v1 }
  0x15   :  { %v40_v5 = vstv %s36_s14  ;;  %v236_v7 = vadd.s32 %v31_v2, %v29_v3 }
  0x16   :  { %v41_v8 = vsub.f32 %v39_v4, %v40_v5 }
  0x17   :  { %v45_v10 = vstv %s152_s16  ;;  %vm33_vm0 = vcmp.ge.s32.totalorder %v236_v7, 16  ;;  %vm34_vm1 = vcmp.eq.s32.totalorder %v236_v7, 0 }
  0x18   :  { %v42_v11 = vmul.f32 %v41_v8, %v41_v8  ;;  %v46_v12 = vsub.f32 %v154_v6, %v45_v10  ;;  %v51_v13 = vstv %s153_s1  ;;  %vm35_vm2 = vmor %vm33_vm0, %vm34_vm1 }
  0x19   :  { %v52_v14 = vsub.f32 %v155_v9, %v51_v13 }
  0x1a   :  { %v47_v15 = vmul.f32 %v46_v12, %v46_v12 }
  0x1b   :  { %v53_v16 = vmul.f32 %v52_v14, %v52_v14 }
  0x1c   :  { %v48_v17 = vadd.f32 %v47_v15, %v42_v11 }
  0x1e   :  { %v54_v18 = vadd.f32 %v53_v16, %v48_v17 }
  0x20   :  { %v55_v19 = vsel %vm35_vm2, -1.0, %v54_v18 }
  0x21   :  { %57 = vst.msk [vmem:[#allocation2] sm:$0xff] %vm56_vm3, %v55_v19 }
  0x22 LB: > { %s103_s26 = scalar_lea.smem [#allocation6], %s207_s23  ;;  %v113_v49 = vld [vmem:[%s275_s0] sm:$0xff]  ;;  %v156_v50 = vld [vmem:[%s275_s0 + $0x8] sm:$0xff]  ;;  %v157_v52 = vld [vmem:[%s275_s0 + $0x10] sm:$0xff]  ;;  %s63_s23 = sadd.s32 1, %s207_s23   ;;  %s207_s23 = sphi %s244_s23, %s63_s23  }
  0x23   : > { %p60_p5 = scmp.ge.s32.totalorder %s63_s23, 4  }
  0x24   :  { %s136_s13 = sshll.u32 (%p60_p5), %s277_s2, 4  ;;  %s137_s13 = int_to_ptr.vmem [resolvable:$true] %s136_s13 }
  0x25   :  { %s185_s14 = scalar_lea.vmem (%p60_p5), %s137_s13, 16  ;;  %p190_p7 = scmp.lt.s32.totalorder (%p60_p5), %s137_s13, %s137_s13 }
  0x26   :  { %p186_p6 = scmp.ne.s32.totalorder (%p60_p5), %s137_s13, %s185_s14  ;;  %p191_p8 = scmp.lt.s32.totalorder (%p60_p5), %s185_s14, %s185_s14 }
  0x28   : > { %v249_v20 = vld [vmem:[#allocation2] sm:$0xff]  ;;  %p192_p9 = por (%p60_p5), %p191_p8, %p190_p7 }
  0x29   : > { %v65_v21 = vsel %vm56_vm3, %v249_v20, -inf }
  0x2a   : > { %66 = vmax.xlane.f32.xlu0 %v65_v21  ;;  %p193_p10 = pnand (%p60_p5), %p192_p9, %p186_p6 }
  0xb3   : > { %v67_v22 = vpop.xlane.xlu0 %66 }
  0xb4   : > { %v68_v23 = vrot.slane %v67_v22, 4 }
  0xb6   : > { %v69_v24 = vmax.f32 %v67_v22, %v68_v23 }
  0xb8   : > { %v70_v25 = vrot.slane %v69_v24, 2 }
  0xba   : > { %v71_v26 = vmax.f32 %v69_v24, %v70_v25 }
  0xbc   : > { %v72_v27 = vrot.slane %v71_v26, 1 }
  0xbe   : > { %v73_v28 = vmax.f32 %v71_v26, %v72_v27 }
  0xc0   : > { %158 = vpush %v73_v28 }
  0xf1   : > { %s159_s24 = spop %158 }
  0xf2   : > { %v75_v29 = vstv %s159_s24 }
  0xf3   : > { %vm76_vm4 = vcmp.ge.f32.partialorder %v249_v20, %v75_v29 }
  0xf4   : > { %v77_v30 = vsel %vm76_vm4, %v236_v7, 16 }
  0xf5   : > { %v78_v31 = vsel %vm56_vm3, %v77_v30, 2147483647 }
  0xf6   : > { %v80_v32 = vshra.s32 %v78_v31, 16  ;;  %v79_v34 = vand.u32 65535, %v78_v31 }
  0xf8   : > { %v82_v33 = vcvt.s32.f32 %v80_v32  ;;  %v81_v36 = vcvt.s32.f32 %v79_v34 }
  0xfa   : > { %83 = vmin.xlane.f32.xlu0 %v82_v33 }
 0x183   : > { %v84_v35 = vpop.xlane.xlu0 %83 }
 0x184   : > { %vm85_vm5 = vcmp.eq.f32.partialorder %v82_v33, %v84_v35  ;;  %v90_v38 = vcvt.f32.s32 %v84_v35 }
 0x185   : > { %v86_v37 = vsel %vm85_vm5, %v81_v36, inf }
 0x186   : > { %87 = vmin.xlane.f32.xlu1 %v86_v37  ;;  %v91_v40 = vshll.u32 %v90_v38, 16 }
 0x20f   : > { %v88_v39 = vpop.xlane.xlu1 %87 }
 0x210   : > { %v89_v41 = vcvt.f32.s32 %v88_v39 }
 0x212   : > { %v92_v42 = vadd.s32 %v91_v40, %v89_v41 }
 0x214   : > { %v93_v43 = vrot.slane %v92_v42, 4 }
 0x216   : > { %vm94_vm6 = vcmp.lt.s32.totalorder %v92_v42, %v93_v43 }
 0x217   : > { %v95_v44 = vsel %vm94_vm6, %v92_v42, %v93_v43 }
 0x218   : > { %v96_v45 = vrot.slane %v95_v44, 2 }
 0x21a   : > { %vm97_vm7 = vcmp.lt.s32.totalorder %v95_v44, %v96_v45 }
 0x21b   : > { %v98_v46 = vsel %vm97_vm7, %v95_v44, %v96_v45 }
 0x21c   : > { %v99_v47 = vrot.slane %v98_v46, 1 }
 0x21e   : > { %vm100_vm8 = vcmp.lt.s32.totalorder %v98_v46, %v99_v47 }
 0x21f   : > { %v101_v48 = vsel %vm100_vm8, %v98_v46, %v99_v47 }
 0x220   : > { %160 = vpush %v101_v48 }
 0x251   : > { %s161_s25 = spop %160 }
 0x252   : > { %104 = sst [smem:[%s103_s26]] %s161_s25  ;;  %s107_s27 = smul.u32 3, %s161_s25  ;;  %v105_v62 = vstv %s161_s25 }
 0x253   : > { %vm106_vm9 = vcmp.eq.s32.totalorder %v236_v7, %v105_v62 }
 0x254   : > { %s108_s28 = sld [smem:[#allocation3 + %s107_s27]]  ;;  %s109_s29 = sadd.s32 1, %s107_s27 }
 0x255   : > { %s110_s30 = sld [smem:[#allocation3 + %s109_s29]]  ;;  %s111_s3 = sadd.s32 2, %s107_s27 }
 0x256   : > { %s112_s4 = sld [smem:[#allocation3 + %s111_s3]] }
 0x25a   : > { %v114_v51 = vstv %s108_s28 }
 0x25b   : > { %v115_v53 = vsub.f32 %v113_v49, %v114_v51  ;;  %v118_v54 = vstv %s110_s30 }
 0x25c   : > { %v119_v55 = vsub.f32 %v156_v50, %v118_v54  ;;  %v123_v56 = vstv %s112_s4 }
 0x25d   : > { %v116_v57 = vmul.f32 %v115_v53, %v115_v53  ;;  %v124_v58 = vsub.f32 %v157_v52, %v123_v56 }
 0x25e   : > { %v120_v59 = vmul.f32 %v119_v55, %v119_v55 }
 0x25f   : > { %v125_v61 = vmul.f32 %v124_v58, %v124_v58 }
 0x260   : > { %v121_v60 = vadd.f32 %v120_v59, %v116_v57 }
 0x262   : > { %v126_v63 = vadd.f32 %v125_v61, %v121_v60 }
 0x263   :  { %62 = sbr.rel (!%p60_p5) target bundleno = 34 (0x22), region = 43 }
 0x264   : > { %v127_v0 = vmin.f32 %v249_v20, %v126_v63 }
 0x266   : > { %v128_v1 = vsel %vm106_vm9, -1.0, %v127_v0 }
 0x267   : > { %129 = vst.msk [vmem:[#allocation2] sm:$0xff] %vm56_vm3, %v128_v1 }
 0x268   :  { %196 = shalt.err (!%p193_p10)
}
 0x269   :  { %s211_s15 = smov [#allocation6]  }
 0x26a   :  { %139 = dma.smem_to_vmem %s211_s15, 16, %s137_s13, [#allocation5]  }
 0x26b   :  { %203 = dma.done.wait [#allocation5], 16  }
 0x26c   :  { %204 = vsyncadd [#allocation5], 4294967280 }
 0x26d   :  { %143 = sfence }
 0x26e   :  { %144 = vsyncpa [#allocation4], 1 }
 0x26f   :  { %145 = vsyncpa [#allocation5], 1 }

// kernel: detection_head_forward.4
= control target key start
LH: loop header
LB: loop body
LE: loop exit
PB: predicated region body
PF: predicated region fallthrough
CT: control target
= control target key end

     0   :  { %v278_v0 = vmov 0.0   ;;  %vm279_vm0 = vmmov 0   ;;  %vm47_vm1 = vcmask 1043456   ;;  %vm43_vm2 = vcmask 64512   ;;  %s352_s3 = inlined_call_operand.vmem [shape: bf16[128,128], index: 3, kind: input, shape index: {}]   ;;  %s353_s2 = inlined_call_operand.vmem [shape: bf16[8,128], index: 2, kind: input, shape index: {}]   ;;  %s354_s0 = inlined_call_operand.vmem [shape: f32[16,8], index: 0, kind: input, shape index: {}]   ;;  %s355_s1 = inlined_call_operand.vmem [shape: bf16[16,128], index: 1, kind: input, shape index: {}]   ;;  %s356_s4 = inlined_call_operand.vmem [shape: f32[1,128], index: 4, kind: input, shape index: {}]   ;;  %s357_s5 = inlined_call_operand.vmem [shape: bf16[16,128], index: 5, kind: output, shape index: {}]  }
   0x1   :  { %247 = vmatprep.subr.bf16.mxu1 %v278_v0  ;;  %v269_v1 = vld [vmem:[%s352_s3 + $0x38] sm:$0xff]   ;;  %241 = vmatprep.subr.bf16.mxu0 %v278_v0  ;;  %v270_v2 = vld [vmem:[%s352_s3 + $0x30] sm:$0xff]   ;;  %v271_v3 = vld [vmem:[%s352_s3 + $0x28] sm:$0xff]  }
   0x2   :  { %243 = vmatprep.mubr.msk.bf16.mxu0 %vm279_vm0, %v278_v0  ;;  %263 = vmatprep.mubr.msk.bf16.mxu1 %vm279_vm0, %v278_v0  ;;  %v42_v4 = vld [vmem:[%s353_s2] sm:$0xf]  ;;  %v40_v7 = vld [vmem:[%s354_s0 + $0x8] sm:$0xff]  ;;  %v273_v10 = vld [vmem:[%s352_s3 + $0x18] sm:$0xff]  }
   0x3   :  { %248 = vmatpush3.bf16.msra.mxu1 %v269_v1  ;;  %v49_v5 = vsel %vm47_vm1, %v42_v4, 0  ;;  %v39_v6 = vld [vmem:[%s354_s0] sm:$0xff]  ;;  %v274_v11 = vld [vmem:[%s352_s3 + $0x10] sm:$0xff]   ;;  %v275_v12 = vld [vmem:[%s352_s3 + $0x8] sm:$0xff]  }
   0x4   :  { %249 = vmatprep.subr.bf16.mxu1 %v278_v0  ;;  %242 = vmatpush3.bf16.msra.mxu0 %v49_v5  ;;  %v41_v8 = vpack.c.bf16 %v40_v7, %v39_v6  ;;  %v272_v9 = vld [vmem:[%s352_s3 + $0x20] sm:$0xff]  }
   0x5   :  { %v276_v13 = vld [vmem:[%s352_s3] sm:$0xff]  }
   0x6   :  { %v277_v14 = vld [vmem:[%s355_s1] sm:$0xff]  }
   0x7   :  { %250 = vmatpush3.bf16.msra.mxu1 %v270_v2  ;;  %244 = vmatmul.mubr.msk.bf16.vlgmr.msra.gmra.mxu0 %vm43_vm2, %v41_v8  ;;  %v220_v22 = vld [vmem:[%s356_s4] ss:$0 sm:$0xff] }
   0x8   :  { %251 = vmatprep.subr.bf16.mxu1 %v278_v0 }
   0xb   :  { %252 = vmatpush3.bf16.msra.mxu1 %v271_v3 }
   0xc   :  { %253 = vmatprep.subr.bf16.mxu1 %v278_v0 }
   0xf   :  { %254 = vmatpush3.bf16.msra.mxu1 %v272_v9 }
  0x10   :  { %255 = vmatprep.subr.bf16.mxu1 %v278_v0 }
  0x13   :  { %256 = vmatpush3.bf16.msra.mxu1 %v273_v10 }
  0x14   :  { %257 = vmatprep.subr.bf16.mxu1 %v278_v0 }
  0x17   :  { %258 = vmatpush3.bf16.msra.mxu1 %v274_v11 }
  0x18   :  { %259 = vmatprep.subr.bf16.mxu1 %v278_v0 }
  0x1b   :  { %260 = vmatpush3.bf16.msra.mxu1 %v275_v12 }
  0x1c   :  { %261 = vmatprep.subr.bf16.mxu1 %v278_v0 }
  0x1f   :  { %262 = vmatpush3.bf16.msra.mxu1 %v276_v13 }
  0x22   :  { %264 = vmatmul.mubr.bf16.vlgmr.msra.gmra.mxu1 %v277_v14 }
  0xc7   :  { %v85_v15 = vpop.f32.mrf.mxu0 }
  0xc9   :  { %v245_v16 = vpop.f32.mrf.mxu0 }
  0xcb   :  { %v88_v17 = vpop.f32.mrf.mxu0 }
  0xcd   :  { %v246_v18 = vpop.f32.mrf.mxu0 }
  0xe2   :  { %v180_v19 = vpop.f32.mrf.mxu1 }
  0xe3   :  { %v181_v21 = vadd.f32 %v180_v19, %v85_v15 }
  0xe4   :  { %v265_v20 = vpop.f32.mrf.mxu1 }
  0xe5   :  { %v194_v26 = vadd.f32 %v220_v22, %v181_v21 }
  0xe6   :  { %v183_v23 = vpop.f32.mrf.mxu1 }
  0xe7   :  { %v184_v24 = vadd.f32 %v183_v23, %v88_v17 }
  0xe8   :  { %v266_v25 = vpop.f32.mrf.mxu1 }
  0xe9   :  { %v195_v27 = vadd.f32 %v220_v22, %v184_v24 }
  0xeb   :  { %v228_v28 = vpack.c.bf16 %v195_v27, %v194_v26 }
  0xed   :  { %229 = vst [vmem:[%s357_s5] sm:$0xff] %v228_v28  }

// kernel: detection_head_forward.7
= control target key start
LH: loop header
LB: loop body
LE: loop exit
PB: predicated region body
PF: predicated region fallthrough
CT: control target
= control target key end

     0   :  { %v743_v0 = vmov 0.0   ;;  %vm744_vm0 = vmmov 0   ;;  %v391_v54 = vlaneseq  ;;  %s991_s8 = inlined_call_operand.vmem [shape: s32[4,1], index: 8, kind: output, shape index: {1}]   ;;  %s992_s1 = inlined_call_operand.vmem [shape: bf16[128,128], index: 1, kind: input, shape index: {}]   ;;  %s993_s3 = inlined_call_operand.vmem [shape: bf16[128,128], index: 3, kind: input, shape index: {}]   ;;  %s994_s0 = inlined_call_operand.vmem [shape: f32[4,128], index: 0, kind: input, shape index: {}]   ;;  %s995_s5 = inlined_call_operand.vmem [shape: bf16[128,128], index: 5, kind: input, shape index: {}]   ;;  %s996_s2 = inlined_call_operand.vmem [shape: f32[1,128], index: 2, kind: input, shape index: {}]   ;;  %s997_s4 = inlined_call_operand.vmem [shape: f32[1,128], index: 4, kind: input, shape index: {}]   ;;  %s998_s6 = inlined_call_operand.vmem [shape: f32[1,128], index: 6, kind: input, shape index: {}]   ;;  %s999_s7 = inlined_call_operand.vmem [shape: f32[4,128], index: 7, kind: output, shape index: {0}]  }
   0x1   :  { %589 = vmatprep.subr.bf16.mxu0 %v743_v0  ;;  %v689_v1 = vld [vmem:[%s992_s1 + $0x38] sm:$0xff]   ;;  %605 = vmatprep.mubr.msk.bf16.mxu0 %vm744_vm0, %v743_v0  ;;  %v690_v2 = vld [vmem:[%s992_s1 + $0x30] sm:$0xff]   ;;  %v691_v3 = vld [vmem:[%s992_s1 + $0x28] sm:$0xff]  }
   0x2   :  { %609 = vmatprep.subr.bf16.mxu1 %v743_v0  ;;  %625 = vmatprep.mubr.msk.bf16.mxu1 %vm744_vm0, %v743_v0  ;;  %v697_v4 = vld [vmem:[%s993_s3 + $0x38] sm:$0xff]   ;;  %v692_v5 = vld [vmem:[%s992_s1 + $0x20] sm:$0xff]   ;;  %v698_v6 = vld [vmem:[%s993_s3 + $0x30] sm:$0xff]   ;;  %v919_v55 = vshrl.u32 %v391_v54, 7 }
   0x3   :  { %590 = vmatpush3.bf16.msra.mxu0 %v689_v1  ;;  %610 = vmatpush3.bf16.msra.mxu1 %v697_v4  ;;  %v693_v7 = vld [vmem:[%s992_s1 + $0x18] sm:$0xff]   ;;  %v699_v8 = vld [vmem:[%s993_s3 + $0x28] sm:$0xff]   ;;  %v694_v9 = vld [vmem:[%s992_s1 + $0x10] sm:$0xff]   ;;  %v933_v1 = vmov 1.0  }
   0x4   :  { %591 = vmatprep.subr.bf16.mxu0 %v743_v0  ;;  %611 = vmatprep.subr.bf16.mxu1 %v743_v0  ;;  %v700_v10 = vld [vmem:[%s993_s3 + $0x20] sm:$0xff]   ;;  %v695_v11 = vld [vmem:[%s992_s1 + $0x8] sm:$0xff]   ;;  %v701_v12 = vld [vmem:[%s993_s3 + $0x18] sm:$0xff]  }
   0x5   :  { %v696_v13 = vld [vmem:[%s992_s1] sm:$0xff]   ;;  %v702_v15 = vld [vmem:[%s993_s3 + $0x10] sm:$0xff]   ;;  %v703_v17 = vld [vmem:[%s993_s3 + $0x8] sm:$0xff]   ;;  %s747_s1 = smov 127  }
   0x6   :  { %v29_v14 = vld [vmem:[%s994_s0] sm:$0xf]  ;;  %v705_v19 = vld [vmem:[%s995_s5 + $0x38] sm:$0xff]   ;;  %v706_v20 = vld [vmem:[%s995_s5 + $0x30] sm:$0xff]   ;;  %s745_s0 = smov 125  }
   0x7   :  { %592 = vmatpush3.bf16.msra.mxu0 %v690_v2  ;;  %612 = vmatpush3.bf16.msra.mxu1 %v698_v6  ;;  %v30_v16 = vpack.c.bf16 %v29_v14, %v29_v14  ;;  %v704_v18 = vld [vmem:[%s993_s3] sm:$0xff]   ;;  %v707_v21 = vld [vmem:[%s995_s5 + $0x28] sm:$0xff]   ;;  %v709_v23 = vld [vmem:[%s995_s5 + $0x18] sm:$0xff]  }
   0x8   :  { %593 = vmatprep.subr.bf16.mxu0 %v743_v0  ;;  %613 = vmatprep.subr.bf16.mxu1 %v743_v0  ;;  %v708_v22 = vld [vmem:[%s995_s5 + $0x20] sm:$0xff]   ;;  %v710_v24 = vld [vmem:[%s995_s5 + $0x10] sm:$0xff]   ;;  %v711_v33 = vld [vmem:[%s995_s5 + $0x8] sm:$0xff]  }
   0x9   :  { %v534_v25 = vld [vmem:[%s996_s2] ss:$0 sm:$0xff] }
   0xa   :  { %v712_v34 = vld [vmem:[%s995_s5] sm:$0xff]  }
   0xb   :  { %594 = vmatpush3.bf16.msra.mxu0 %v691_v3  ;;  %614 = vmatpush3.bf16.msra.mxu1 %v699_v8  ;;  %v543_v35 = vld [vmem:[%s997_s4] ss:$0 sm:$0xff] }
   0xc   :  { %595 = vmatprep.subr.bf16.mxu0 %v743_v0  ;;  %615 = vmatprep.subr.bf16.mxu1 %v743_v0  ;;  %v552_v43 = vld [vmem:[%s998_s6] ss:$0 sm:$0xff]  ;;  %s746_s6 = smov 126  }
   0xf   :  { %596 = vmatpush3.bf16.msra.mxu0 %v692_v5  ;;  %616 = vmatpush3.bf16.msra.mxu1 %v700_v10 }
  0x10   :  { %597 = vmatprep.subr.bf16.mxu0 %v743_v0  ;;  %617 = vmatprep.subr.bf16.mxu1 %v743_v0 }
  0x13   :  { %598 = vmatpush3.bf16.msra.mxu0 %v693_v7  ;;  %618 = vmatpush3.bf16.msra.mxu1 %v701_v12 }
  0x14   :  { %599 = vmatprep.subr.bf16.mxu0 %v743_v0  ;;  %619 = vmatprep.subr.bf16.mxu1 %v743_v0 }
  0x17   :  { %600 = vmatpush3.bf16.msra.mxu0 %v694_v9  ;;  %620 = vmatpush3.bf16.msra.mxu1 %v702_v15 }
  0x18   :  { %601 = vmatprep.subr.bf16.mxu0 %v743_v0  ;;  %621 = vmatprep.subr.bf16.mxu1 %v743_v0 }
  0x1b   :  { %602 = vmatpush3.bf16.msra.mxu0 %v695_v11  ;;  %622 = vmatpush3.bf16.msra.mxu1 %v703_v17 }
  0x1c   :  { %603 = vmatprep.subr.bf16.mxu0 %v743_v0  ;;  %623 = vmatprep.subr.bf16.mxu1 %v743_v0 }
  0x1f   :  { %604 = vmatpush3.bf16.msra.mxu0 %v696_v13  ;;  %624 = vmatpush3.bf16.msra.mxu1 %v704_v18 }
  0x20   :  { %629 = vmatprep.subr.bf16.mxu0 %v743_v0 }
  0x22   :  { %606 = vmatmul.mubr.bf16.vlgmr.msra.gmra.mxu0 %v30_v16 }
  0x23   :  { %645 = vmatprep.mubr.msk.bf16.mxu0 %vm744_vm0, %v743_v0  ;;  %630 = vmatpush3.bf16.msra.mxu0 %v705_v19 }
  0x24   :  { %631 = vmatprep.subr.bf16.mxu0 %v743_v0 }
  0x27   :  { %632 = vmatpush3.bf16.msra.mxu0 %v706_v20 }
  0x28   :  { %633 = vmatprep.subr.bf16.mxu0 %v743_v0 }
  0x2b   :  { %634 = vmatpush3.bf16.msra.mxu0 %v707_v21 }
  0x2c   :  { %635 = vmatprep.subr.bf16.mxu0 %v743_v0 }
  0x2f   :  { %636 = vmatpush3.bf16.msra.mxu0 %v708_v22 }
  0x30   :  { %637 = vmatprep.subr.bf16.mxu0 %v743_v0 }
  0x33   :  { %638 = vmatpush3.bf16.msra.mxu0 %v709_v23 }
  0x34   :  { %639 = vmatprep.subr.bf16.mxu0 %v743_v0 }
  0x37   :  { %640 = vmatpush3.bf16.msra.mxu0 %v710_v24 }
  0x38   :  { %641 = vmatprep.subr.bf16.mxu0 %v743_v0 }
  0x3b   :  { %642 = vmatpush3.bf16.msra.mxu0 %v711_v33 }
  0x3c   :  { %643 = vmatprep.subr.bf16.mxu0 %v743_v0  ;;  %v931_v0 = vmov 0.0  }
  0x3f   :  { %644 = vmatpush3.bf16.msra.mxu0 %v712_v34 }
  0xe2   :  { %v136_v26 = vpop.f32.mrf.mxu0 }
  0xe3   :  { %v137_v27 = vadd.f32 %v534_v25, %v136_v26 }
  0xe4   :  { %v607_v28 = vpop.f32.mrf.mxu0 }
  0xe5   :  { %v142_v29 = vmax.f32 %v137_v27, 0.0 }
  0xe6   :  { %v139_v30 = vpop.f32.mrf.mxu0 }
  0xe7   :  { %v143_v31 = vpack.c.bf16 %v142_v29, %v142_v29 }
  0xe8   :  { %v608_v32 = vpop.f32.mrf.mxu0 }
  0xe9   :  { %626 = vmatmul.mubr.bf16.vlgmr.msra.gmra.mxu1 %v143_v31 }
 0x1a9   :  { %v249_v36 = vpop.f32.mrf.mxu1 }
 0x1aa   :  { %v250_v37 = vadd.f32 %v543_v35, %v249_v36 }
 0x1ab   :  { %v627_v38 = vpop.f32.mrf.mxu1 }
 0x1ac   :  { %v255_v39 = vmax.f32 %v250_v37, 0.0 }
 0x1ad   :  { %v252_v40 = vpop.f32.mrf.mxu1 }
 0x1ae   :  { %v256_v41 = vpack.c.bf16 %v255_v39, %v255_v39 }
 0x1af   :  { %v628_v42 = vpop.f32.mrf.mxu1 }
 0x1b0   :  { %646 = vmatmul.mubr.bf16.vlgmr.msra.gmra.mxu0 %v256_v41 }
 0x270   :  { %v362_v44 = vpop.f32.mrf.mxu0 }
 0x271   :  { %v363_v45 = vadd.f32 %v552_v43, %v362_v44 }
 0x272   :  { %v647_v46 = vpop.f32.mrf.mxu0 }
 0x273   :  { %v368_v47 = vsub.f32 0.0, %v363_v45 }
 0x274   :  { %v365_v48 = vpop.f32.mrf.mxu0 }
 0x275   :  { %v369_v49 = vmul.f32 1.442695, %v368_v47 }
 0x276   :  { %v648_v50 = vpop.f32.mrf.mxu0 }
 0x277   :  { %713 = vpow2.f32 %v369_v49 }
 0x284   :  { %v714_v51 = vpop.eup %713 }
 0x285   :  { %v371_v52 = vadd.f32 1.0, %v714_v51 }
 0x287   :  { %715 = vrcp.f32 %v371_v52 }
 0x294   :  { %v912_v53 = vpop.eup %715 }
 0x295   :  { %374 = vst [vmem:[%s999_s7] sm:$0xf] %v912_v53  ;;  %376 = vrot.lane.b32.xlu0 %v912_v53, %s745_s0  ;;  %s935_s7 = smov 0  }
 0x307   :  { %v377_v56 = vpop.permute.xlu0 %376 }
 0x308   :  { %v922_v57 = vmin.f32 %v912_v53, %v377_v56  ;;  %v925_v58 = vmax.f32 %v912_v53, %v377_v56 }
 0x30a   :  { %v381_v59 = vsub.f32 %v925_v58, %v922_v57 }
 0x30c   :  { %387 = vrot.lane.b32.xlu1 %v381_v59, %s746_s6  ;;  %383 = vrot.lane.b32.xlu0 %v381_v59, %s747_s1 }
 0x37e   :  { %v384_v60 = vpop.permute.xlu0 %383  ;;  %v388_v62 = vpop.permute.xlu1 %387 }
 0x37f   :  { %v386_v61 = vmul.f32 %v384_v60, %v381_v59 }
 0x381   :  { %v929_v63 = vmul.f32 %v388_v62, %v386_v61 }
 0x382 LB: > { %s748_s13 = smov 1   ;;  %vm401_vm1 = vcmp.gt.f32.partialorder %v737_v1, 0.5  ;;  %vm406_vm2 = vcmask 11272   ;;  %v749_v36 = vmov 0.0   ;;  %vm451_vm10 = vcmask 27656   ;;  %s750_s17 = smov 127   ;;  %s741_s7 = sphi %s935_s7, %s398_s7   ;;  %v737_v1 = vphi %v933_v1, %v510_v1   ;;  %v733_v0 = vphi %v931_v0, %v1004_v0  }
 0x383   : > { %402 = vrot.lane.b32.xlu0 %v912_v53, %s748_s13  ;;  %s751_s18 = smov 126   ;;  %vm472_vm12 = vcmask 3072   ;;  %s398_s7 = sadd.s32 1, %s741_s7  }
 0x384   : > { %p395_p1 = scmp.ge.s32.totalorder %s398_s7, 4  }
 0x3f5   : > { %v403_v2 = vpop.permute.xlu0 %402 }
 0x3f6   : > { %v405_v3 = vsel %vm401_vm1, %v403_v2, -1.0 }
 0x3f7   : > { %v407_v4 = vsel %vm406_vm2, %v405_v3, -inf }
 0x3f8   : > { %408 = vmax.xlane.f32.xlu0 %v407_v4 }
 0x481   : > { %v409_v5 = vpop.xlane.xlu0 %408 }
 0x482   : > { %v410_v6 = vrot.slane %v409_v5, 4 }
 0x484   : > { %v411_v7 = vmax.f32 %v409_v5, %v410_v6 }
 0x486   : > { %v412_v8 = vrot.slane %v411_v7, 2 }
 0x488   : > { %v413_v9 = vmax.f32 %v411_v7, %v412_v8 }
 0x48a   : > { %v414_v10 = vrot.slane %v413_v9, 1 }
 0x48c   : > { %v415_v11 = vmax.f32 %v413_v9, %v414_v10 }
 0x48e   : > { %649 = vpush %v415_v11 }
 0x4bf   : > { %s947_s14 = spop %649 }
 0x4c0   : > { %v418_v12 = vstv %s947_s14  ;;  %p417_p0 = scmp.ge.f32.partialorder %s947_s14, 0.0 }
 0x4c1   : > { %vm419_vm3 = vcmp.ge.f32.partialorder %v405_v3, %v418_v12 }
 0x4c2   : > { %v420_v13 = vsel %vm419_vm3, %v919_v55, 4  ;;  %s502_s15 = scalar_select %p417_p0, 1, 0 }
 0x4c3   : > { %v421_v14 = vsel %vm406_vm2, %v420_v13, 2147483647 }
 0x4c4   : > { %v423_v15 = vshra.s32 %v421_v14, 16  ;;  %v422_v17 = vand.u32 65535, %v421_v14  ;;  %v503_v32 = vstv %s502_s15 }
 0x4c5   : > { %vm953_vm8 = vcmp.eq.s32.totalorder %v503_v32, 1 }
 0x4c6   : > { %v425_v16 = vcvt.s32.f32 %v423_v15  ;;  %v424_v19 = vcvt.s32.f32 %v422_v17 }
 0x4c8   : > { %426 = vmin.xlane.f32.xlu1 %v425_v16 }
 0x551   : > { %v427_v18 = vpop.xlane.xlu1 %426 }
 0x552   : > { %vm428_vm4 = vcmp.eq.f32.partialorder %v425_v16, %v427_v18  ;;  %v433_v21 = vcvt.f32.s32 %v427_v18 }
 0x553   : > { %v429_v20 = vsel %vm428_vm4, %v424_v19, inf }
 0x554   : > { %430 = vmin.xlane.f32.xlu1 %v429_v20  ;;  %v434_v23 = vshll.u32 %v433_v21, 16  ;;  %v752_v21 = vmov (%p395_p1), 0  }
 0x5dd   : > { %v431_v22 = vpop.xlane.xlu1 %430 }
 0x5de   : > { %v432_v24 = vcvt.f32.s32 %v431_v22 }
 0x5e0   : > { %v435_v25 = vadd.s32 %v434_v23, %v432_v24 }
 0x5e2   : > { %v436_v26 = vrot.slane %v435_v25, 4 }
 0x5e4   : > { %vm437_vm5 = vcmp.lt.s32.totalorder %v435_v25, %v436_v26 }
 0x5e5   : > { %v438_v27 = vsel %vm437_vm5, %v435_v25, %v436_v26 }
 0x5e6   : > { %v439_v28 = vrot.slane %v438_v27, 2 }
 0x5e8   : > { %vm440_vm6 = vcmp.lt.s32.totalorder %v438_v27, %v439_v28 }
 0x5e9   : > { %v441_v29 = vsel %vm440_vm6, %v438_v27, %v439_v28 }
 0x5ea   : > { %v442_v30 = vrot.slane %v441_v29, 1 }
 0x5ec   : > { %vm443_vm7 = vcmp.lt.s32.totalorder %v441_v29, %v442_v30 }
 0x5ed   : > { %v444_v31 = vsel %vm443_vm7, %v441_v29, %v442_v30 }
 0x5ee   : > { %651 = vpush %v444_v31 }
 0x61f   : > { %s652_s16 = spop %651 }
 0x620   : > { %v446_v33 = vstv %s652_s16 }
 0x621   : > { %vm958_vm9 = vcmp.eq.s32.totalorder %v919_v55, %v446_v33 }
 0x622   : > { %v561_v37 = vsel %vm958_vm9, 1.0, %v749_v36  ;;  %vm505_vm11 = vmand %vm953_vm8, %vm958_vm9 }
 0x623   : > { %v450_v38 = vmul.f32 %v561_v37, %v922_v57  ;;  %v459_v39 = vmul.f32 %v561_v37, %v925_v58  ;;  %v506_v40 = vsel %vm505_vm11, 1.0, %v733_v0   ;;  %v467_v41 = vmul.f32 %v561_v37, %v929_v63 }
 0x624   :  { %vm511_vm0 = vcmp.gt.f32.partialorder (%p395_p1), %v506_v40, 0.5 }
 0x625   : > { %v452_v42 = vsel %vm451_vm10, %v450_v38, 0.0  ;;  %v460_v43 = vsel %vm451_vm10, %v459_v39, 0.0  ;;  %469 = vrot.lane.b32.xlu1 %v467_v41, %s750_s17  ;;  %v512_v22 = vsel (%p395_p1), %vm511_vm0, 1, %v752_v21 }
 0x626   : > { %v453_v44 = vrot.slane %v452_v42, 4  ;;  %v461_v45 = vrot.slane %v460_v43, 4  ;;  %514 = vst.msk [vmem:[%s991_s8] sm:$0xf] (%p395_p1), %vm472_vm12, %v512_v22 }
 0x628   : > { %v454_v46 = vadd.f32 %v453_v44, %v452_v42  ;;  %v462_v47 = vadd.f32 %v461_v45, %v460_v43 }
 0x62a   : > { %v455_v48 = vrot.slane %v454_v46, 2  ;;  %v463_v49 = vrot.slane %v462_v47, 2 }
 0x62c   : > { %v456_v50 = vadd.f32 %v455_v48, %v454_v46  ;;  %v464_v51 = vadd.f32 %v463_v49, %v462_v47 }
 0x62e   : > { %v457_v52 = vrot.slane %v456_v50, 1  ;;  %v465_v54 = vrot.slane %v464_v51, 1 }
 0x630   : > { %v458_v56 = vadd.f32 %v457_v52, %v456_v50  ;;  %v466_v59 = vadd.f32 %v465_v54, %v464_v51 }
 0x632   : > { %v483_v60 = vmin.f32 %v925_v58, %v466_v59  ;;  %v484_v61 = vmax.f32 %v922_v57, %v458_v56 }
 0x634   : > { %v485_v62 = vsub.f32 %v483_v60, %v484_v61 }
 0x636   : > { %v486_v0 = vmax.f32 %v485_v62, 0.0 }
 0x638   : > { %488 = vrot.lane.b32.xlu0 %v486_v0, %s750_s17 }
 0x63c   : > { %492 = vrot.lane.b32.xlu0 %v486_v0, %s751_s18 }
 0x697   : > { %v470_v2 = vpop.permute.xlu1 %469 }
 0x698   : > { %v473_v3 = vsel %vm472_vm12, %v470_v2, 0.0 }
 0x699   : > { %474 = vadd.xlane.f32.xlu1 %v473_v3 }
 0x6aa   : > { %v489_v11 = vpop.permute.xlu0 %488 }
 0x6ab   : > { %v491_v13 = vmul.f32 %v489_v11, %v486_v0  ;;  %v1004_v0 = vmov %v506_v40 }
 0x6ae   : > { %v493_v12 = vpop.permute.xlu0 %492 }
 0x6af   : > { %v495_v15 = vmul.f32 %v493_v12, %v491_v13 }
 0x722   : > { %v475_v4 = vpop.xlane.xlu1 %474 }
 0x723   : > { %v476_v5 = vrot.slane %v475_v4, 4 }
 0x725   : > { %v477_v6 = vadd.f32 %v476_v5, %v475_v4 }
 0x727   : > { %v478_v7 = vrot.slane %v477_v6, 2 }
 0x729   : > { %v479_v8 = vadd.f32 %v478_v7, %v477_v6 }
 0x72b   : > { %v480_v9 = vrot.slane %v479_v8, 1 }
 0x72d   : > { %v481_v10 = vadd.f32 %v480_v9, %v479_v8 }
 0x72f   : > { %653 = vpush %v481_v10 }
 0x760   : > { %s654_s19 = spop %653 }
 0x761   : > { %v496_v14 = vstv %s654_s19 }
 0x762   : > { %v497_v16 = vadd.f32 %v496_v14, %v929_v63 }
 0x764   : > { %v498_v17 = vsub.f32 %v497_v16, %v495_v15 }
 0x766   : > { %v499_v18 = vadd.f32 1e-09, %v498_v17 }
 0x768   : > { %717 = vrcp.f32 %v499_v18 }
 0x775   : > { %v718_v19 = vpop.eup %717 }
 0x776   : > { %v501_v20 = vmul.f32 %v718_v19, %v495_v15 }
 0x777   :  { %397 = sbr.rel (!%p395_p1) target bundleno = 898 (0x382), region = 63 }
 0x778   : > { %vm507_vm13 = vcmp.gt.f32.partialorder %v501_v20, 0.25 }
 0x779   : > { %vm508_vm14 = vmor %vm507_vm13, %vm958_vm9 }
 0x77a   : > { %vm509_vm15 = vmand %vm953_vm8, %vm508_vm14 }
 0x77b   : > { %v510_v1 = vsel %vm509_vm15, 0.0, %v737_v1  }

// kernel: detection_head_forward.6
= control target key start
LH: loop header
LB: loop body
LE: loop exit
PB: predicated region body
PF: predicated region fallthrough
CT: control target
= control target key end

     0   :  { %12 = vsyncpa [#allocation3], 0  ;;  %s1588_s0 = inlined_call_operand.vmem [shape: s32[4], index: 0, kind: input, shape index: {}]   ;;  %s1589_s1 = inlined_call_operand.vmem [shape: f32[48], index: 1, kind: input, shape index: {}]   ;;  %s1590_s2 = inlined_call_operand.vmem [shape: f32[16,8], index: 2, kind: input, shape index: {}]   ;;  %s1591_s3 = inlined_call_operand.vmem [shape: bf16[16,128], index: 3, kind: input, shape index: {}]   ;;  %s1592_s4 = inlined_call_operand.vmem [shape: f32[8,128], index: 4, kind: input, shape index: {}]   ;;  %s1593_s5 = inlined_call_operand.vmem [shape: bf16[128,128], index: 5, kind: input, shape index: {}]   ;;  %s1594_s6 = inlined_call_operand.vmem [shape: f32[1,128], index: 6, kind: input, shape index: {}]   ;;  %s1595_s7 = inlined_call_operand.vmem [shape: f32[4,128], index: 7, kind: output, shape index: {}]  }
   0x1   :  { %s20_s26 = sshll.u32 %s1588_s0, 4  ;;  %s21_s26 = int_to_ptr.vmem [resolvable:$true] %s20_s26 }
   0x2   :  { %13 = vsyncpa [#allocation5], 0  ;;  %s30_s29 = sshll.u32 %s1589_s1, 4  ;;  %s1183_s30 = scalar_lea.vmem %s21_s26, 16  ;;  %s31_s29 = int_to_ptr.vmem [resolvable:$true] %s30_s29 }
   0x3   :  { %p1184_p0 = scmp.ne.s32.totalorder %s21_s26, %s1183_s30  ;;  %p1188_p1 = scmp.lt.s32.totalorder %s21_s26, %s21_s26 }
   0x4   :  { %p1189_p2 = scmp.lt.s32.totalorder %s1183_s30, %s1183_s30 }
   0x6   :  { %p1190_p3 = por %p1189_p2, %p1188_p1 }
   0x8   :  { %p1191_p4 = pnand %p1190_p3, %p1184_p0 }
   0xa   :  { %1194 = shalt.err (!%p1191_p4)
}
   0xb   :  { %s1211_s8 = smov [#allocation2]   ;;  %s1195_s9 = scalar_lea.vmem %s31_s29, 16 }
   0xc   :  { %23 = dma.vmem_to_smem %s21_s26, 16, %s1211_s8, [#allocation3]  }
   0xd   :  { %p1196_p5 = scmp.ne.s32.totalorder %s31_s29, %s1195_s9  ;;  %p1200_p6 = scmp.lt.s32.totalorder %s31_s29, %s31_s29 }
   0xe   :  { %p1201_p7 = scmp.lt.s32.totalorder %s1195_s9, %s1195_s9 }
  0x10   :  { %p1202_p8 = por %p1201_p7, %p1200_p6 }
  0x12   :  { %p1203_p9 = pnand %p1202_p8, %p1196_p5 }
  0x14   :  { %1206 = shalt.err (!%p1203_p9)
}
  0x15   :  { %s1212_s0 = smov [#allocation4]  }
  0x16   :  { %33 = dma.vmem_to_smem %s31_s29, 16, %s1212_s0, [#allocation5]  }
  0x17   :  { %1207 = dma.done.wait [#allocation3], 16  }
  0x18   :  { %1208 = vsyncadd [#allocation3], 4294967280 }
  0x19   :  { %1209 = dma.done.wait [#allocation5], 16  }
  0x1a   :  { %1210 = vsyncadd [#allocation5], 4294967280 }
  0x1b   :  { %50 = sfence }
  0x1c   :  { %s73_s1 = sld [smem:[#allocation2]]  ;;  %v1213_v0 = vmov 0.0   ;;  %v1281_v1 = vld [vmem:[%s1590_s2] sm:$0xff]  ;;  %v1286_v2 = vld [vmem:[%s1590_s2 + $0x8] sm:$0xff]  ;;  %s1214_s2 = smov 127   ;;  %vm121_vm1 = vcmask 7168  }
  0x1d   :  { %56 = vst [vmem:[%s1595_s7] sm:$0xf] %v1213_v0  ;;  %s1215_s22 = smov 126   ;;  %v1003_v31 = vld [vmem:[%s1591_s3] sm:$0xff]  }
  0x1e   :  { %v1319_v32 = vunpack.c.l.bf16 %v1003_v31  ;;  %v1321_v33 = vunpack.c.h.bf16 %v1003_v31 }
  0x22   :  { %s74_s10 = smul.u32 3, %s73_s1 }
  0x24   :  { %s76_s11 = sadd.s32 1, %s74_s10  ;;  %s78_s12 = sadd.s32 2, %s74_s10 }
  0x25   :  { %s77_s15 = sld [smem:[#allocation4 + %s76_s11]] }
  0x26   :  { %s79_s16 = sld [smem:[#allocation4 + %s78_s12]] }
  0x27   :  { %s75_s17 = sld [smem:[#allocation4 + %s74_s10]] }
  0x2b   :  { %v1288_v3 = vstv %s77_s15 }
  0x2c   :  { %v84_v4 = vsub.f32 %v1281_v1, %v1288_v3  ;;  %v85_v5 = vsub.f32 %v1286_v2, %v1288_v3  ;;  %v1294_v6 = vstv %s79_s16 }
  0x2d   :  { %v87_v7 = vsub.f32 %v1281_v1, %v1294_v6  ;;  %v88_v8 = vsub.f32 %v1286_v2, %v1294_v6  ;;  %v1300_v9 = vstv %s75_s17 }
  0x2e   :  { %v91_v10 = vmul.f32 %v84_v4, %v84_v4  ;;  %v81_v11 = vsub.f32 %v1281_v1, %v1300_v9  ;;  %v82_v12 = vsub.f32 %v1286_v2, %v1300_v9  ;;  %v92_v14 = vmul.f32 %v85_v5, %v85_v5 }
  0x2f   :  { %v103_v13 = vmul.f32 %v87_v7, %v87_v7  ;;  %v104_v15 = vmul.f32 %v88_v8, %v88_v8 }
  0x30   :  { %95 = vrot.lane.b32.xlu0 %v91_v10, %s1214_s2  ;;  %v89_v16 = vmul.f32 %v81_v11, %v81_v11  ;;  %v90_v20 = vmul.f32 %v82_v12, %v82_v12 }
  0x31   :  { %107 = vrot.lane.b32.xlu1 %v103_v13, %s1215_s22 }
  0x34   :  { %97 = vrot.lane.b32.xlu0 %v92_v14, %s1214_s2 }
  0x35   :  { %109 = vrot.lane.b32.xlu1 %v104_v15, %s1215_s22 }
  0xa2   :  { %v96_v17 = vpop.permute.xlu0 %95 }
  0xa3   :  { %v101_v18 = vadd.f32 %v96_v17, %v89_v16  ;;  %v108_v19 = vpop.permute.xlu1 %107 }
  0xa5   :  { %v113_v21 = vadd.f32 %v108_v19, %v101_v18 }
  0xa6   :  { %v98_v22 = vpop.permute.xlu0 %97 }
  0xa7   :  { %vm115_vm0 = vcmp.le.f32.partialorder %v113_v21, 2.25  ;;  %v102_v23 = vadd.f32 %v98_v22, %v90_v20  ;;  %v110_v24 = vpop.permute.xlu1 %109 }
  0xa8   :  { %v119_v26 = vsel %vm115_vm0, 1.0, %v1213_v0 }
  0xa9   :  { %v114_v25 = vadd.f32 %v110_v24, %v102_v23  ;;  %v122_v28 = vsel %vm121_vm1, %v119_v26, -inf }
  0xab   :  { %vm116_vm2 = vcmp.le.f32.partialorder %v114_v25, 2.25 }
  0xac   :  { %v120_v27 = vsel %vm116_vm2, 1.0, %v1213_v0 }
  0xad   :  { %v123_v29 = vsel %vm121_vm1, %v120_v27, -inf }
  0xae   :  { %v124_v30 = vmax.f32 %v122_v28, %v123_v29 }
  0xb0   :  { %125 = vmax.xlane.f32.xlu0 %v124_v30 }
 0x139   :  { %v126_v34 = vpop.xlane.xlu0 %125 }
 0x13a   :  { %v127_v35 = vrot.slane %v126_v34, 4 }
 0x13c   :  { %v128_v36 = vmax.f32 %v126_v34, %v127_v35 }
 0x13e   :  { %v129_v37 = vrot.slane %v128_v36, 2 }
 0x140   :  { %v130_v38 = vmax.f32 %v128_v36, %v129_v37 }
 0x142   :  { %v131_v39 = vrot.slane %v130_v38, 1 }
 0x144   :  { %v132_v40 = vmax.f32 %v130_v38, %v131_v39 }
 0x146   :  { %1122 = vpush %v132_v40 }
 0x177   :  { %s1123_s25 = spop %1122 }
 0x178   :  { %p134_p10 = scmp.gt.f32.partialorder %s1123_s25, 0.0 }
 0x179   :  { %v1148_v41 = vld [vmem:[%s1593_s5 + $0x38] sm:$0xff] (%p134_p10)   ;;  %v1216_v42 = vmov (%p134_p10), 0.0   ;;  %v1149_v43 = vld [vmem:[%s1593_s5 + $0x30] sm:$0xff] (%p134_p10)   ;;  %vm1217_vm3 = vmmov (%p134_p10), 0   ;;  %v1218_v44 = vmov (%p134_p10), 0   ;;  %v148_v45 = vlaneseq (%p134_p10)  ;;  %v1150_v47 = vld [vmem:[%s1593_s5 + $0x28] sm:$0xff] (%p134_p10)  }
 0x17a   :  { %139 = sbr.rel (!%p134_p10) target bundleno = 629 (0x275), region = 45  ;;  %1042 = vmatprep.subr.bf16.mxu0 (%p134_p10), %v1216_v42  ;;  %1058 = vmatprep.mubr.msk.bf16.mxu0 (%p134_p10), %vm1217_vm3, %v1216_v42  ;;  %v271_v46 = vsel (%p134_p10), %vm115_vm0, 1, %v1218_v44  ;;  %v272_v48 = vsel (%p134_p10), %vm116_vm2, 1, %v1218_v44  ;;  %v140_v49 = vld [vmem:[%s1592_s4] sm:$0x1] (%p134_p10)  ;;  %v1152_v60 = vld [vmem:[%s1593_s5 + $0x18] sm:$0xff] (%p134_p10)  }
 0x17b   :  { %1043 = vmatpush3.bf16.msra.mxu0 (%p134_p10), %v1148_v41  ;;  %1147 = vset.pattern.permute.xlu0 (%p134_p10), %v1218_v44  ;;  %v142_v50 = vld [vmem:[%s1592_s4 + $0x1] sm:$0x1] (%p134_p10)  ;;  %v145_v51 = vld [vmem:[%s1592_s4 + $0x2] sm:$0x1] (%p134_p10)  ;;  %v141_v52 = vmul.f32 (%p134_p10), %v140_v49, %v1300_v9  ;;  %v149_v55 = vshrl.u32 (%p134_p10), %v148_v45, 7  ;;  %v1153_v62 = vld [vmem:[%s1593_s5 + $0x10] sm:$0xff] (%p134_p10)  }
 0x17c   :  { %1044 = vmatprep.subr.bf16.mxu0 (%p134_p10), %v1216_v42  ;;  %274 = vperm.xlu0 (%p134_p10), %1147, %v271_v46   ;;  %v143_v53 = vmul.f32 (%p134_p10), %v142_v50, %v1288_v3  ;;  %v146_v54 = vmul.f32 (%p134_p10), %v145_v51, %v1294_v6  ;;  %v1151_v56 = vld [vmem:[%s1593_s5 + $0x20] sm:$0xff] (%p134_p10)   ;;  %v1154_v4 = vld [vmem:[%s1593_s5 + $0x8] sm:$0xff] (%p134_p10)  }
 0x17d   :  { %v150_v59 = vsub.s32 (%p134_p10), 0, %v149_v55  ;;  %v1155_v7 = vld [vmem:[%s1593_s5] sm:$0xff] (%p134_p10)  }
 0x17e   :  { %v144_v57 = vadd.f32 (%p134_p10), %v143_v53, %v141_v52  ;;  %v960_v9 = vld [vmem:[%s1594_s6] ss:$0 sm:$0xff] (%p134_p10) }
 0x17f   :  { %1045 = vmatpush3.bf16.msra.mxu0 %v1149_v43  ;;  %v283_v28 = vld [vmem:[%s1595_s7] sm:$0x1] }
 0x180   :  { %1046 = vmatprep.subr.bf16.mxu0 %v1216_v42  ;;  %277 = vperm.xlu0 %1147, %v272_v48   ;;  %v147_v58 = vadd.f32 %v146_v54, %v144_v57 }
 0x182   :  { %v151_v61 = vrot.slane %v147_v58, %v150_v59 }
 0x183   :  { %1047 = vmatpush3.bf16.msra.mxu0 %v1150_v47 }
 0x184   :  { %1048 = vmatprep.subr.bf16.mxu0 %v1216_v42  ;;  %v152_v63 = vadd.f32 %v1319_v32, %v151_v61  ;;  %v153_v3 = vadd.f32 %v1321_v33, %v151_v61 }
 0x186   :  { %v154_v5 = vmax.f32 %v152_v63, 0.0  ;;  %v155_v6 = vmax.f32 %v153_v3, 0.0 }
 0x187   :  { %1049 = vmatpush3.bf16.msra.mxu0 %v1151_v56 }
 0x188   :  { %1050 = vmatprep.subr.bf16.mxu0 %v1216_v42  ;;  %v156_v8 = vpack.c.bf16 %v155_v6, %v154_v5 }
 0x18b   :  { %1051 = vmatpush3.bf16.msra.mxu0 %v1152_v60 }
 0x18c   :  { %1052 = vmatprep.subr.bf16.mxu0 %v1216_v42 }
 0x18f   :  { %1053 = vmatpush3.bf16.msra.mxu0 %v1153_v62 }
 0x190   :  { %1054 = vmatprep.subr.bf16.mxu0 %v1216_v42 }
 0x193   :  { %1055 = vmatpush3.bf16.msra.mxu0 %v1154_v4 }
 0x194   :  { %1056 = vmatprep.subr.bf16.mxu0 %v1216_v42 }
 0x197   :  { %1057 = vmatpush3.bf16.msra.mxu0 %v1155_v7 }
 0x19a   :  { %1059 = vmatmul.mubr.bf16.vlgmr.msra.gmra.mxu0 %v156_v8 }
 0x1f7   :  { %v275_v10 = vpop.permute.xlu0 %274 }
 0x1f8   :  { %vm279_vm4 = vcmp.eq.s32.totalorder %v275_v10, 1 }
 0x1fb   :  { %v278_v16 = vpop.permute.xlu0 %277 }
 0x1fc   :  { %vm280_vm5 = vcmp.eq.s32.totalorder %v278_v16, 1 }
 0x25a   :  { %v262_v11 = vpop.f32.mrf.mxu0 }
 0x25b   :  { %v263_v12 = vadd.f32 %v960_v9, %v262_v11 }
 0x25c   :  { %v1060_v13 = vpop.f32.mrf.mxu0 }
 0x25d   :  { %v269_v15 = vmax.f32 %v263_v12, 0.0 }
 0x25e   :  { %v265_v14 = vpop.f32.mrf.mxu0 }
 0x25f   :  { %v266_v17 = vadd.f32 %v960_v9, %v265_v14  ;;  %v281_v20 = vsel %vm279_vm4, %v269_v15, 0.0 }
 0x260   :  { %v1061_v18 = vpop.f32.mrf.mxu0 }
 0x261   :  { %v270_v19 = vmax.f32 %v266_v17, 0.0 }
 0x263   :  { %v282_v21 = vsel %vm280_vm5, %v270_v19, 0.0 }
 0x264   :  { %v284_v22 = vmax.f32 %v281_v20, %v282_v21 }
 0x266   :  { %v285_v23 = vrot.slane %v284_v22, 4 }
 0x268   :  { %v286_v24 = vmax.f32 %v284_v22, %v285_v23 }
 0x26a   :  { %v287_v25 = vrot.slane %v286_v24, 2 }
 0x26c   :  { %v288_v26 = vmax.f32 %v286_v24, %v287_v25 }
 0x26e   :  { %v289_v27 = vrot.slane %v288_v26, 1 }
 0x270   :  { %v290_v29 = vmax.f32 %v288_v26, %v289_v27 }
 0x272   :  { %v291_v30 = vmax.f32 %v283_v28, %v290_v29 }
 0x274   :  { %292 = vst [vmem:[%s1595_s7] sm:$0x1] %v291_v30 }
 0x275 PF:  { %s969_s28 = sld [smem:[#allocation2 + $0x1]] }
 0x27b   :  { %s295_s29 = smul.u32 3, %s969_s28 }
 0x27d   :  { %s297_s30 = sadd.s32 1, %s295_s29  ;;  %s299_s8 = sadd.s32 2, %s295_s29 }
 0x27e   :  { %s298_s9 = sld [smem:[#allocation4 + %s297_s30]] }
 0x27f   :  { %s300_s0 = sld [smem:[#allocation4 + %s299_s8]] }
 0x280   :  { %s296_s1 = sld [smem:[#allocation4 + %s295_s29]] }
 0x284   :  { %v1372_v31 = vstv %s298_s9 }
 0x285   :  { %v305_v34 = vsub.f32 %v1281_v1, %v1372_v31  ;;  %v1376_v35 = vstv %s300_s0  ;;  %v306_v36 = vsub.f32 %v1286_v2, %v1372_v31 }
 0x286   :  { %v308_v37 = vsub.f32 %v1281_v1, %v1376_v35  ;;  %v309_v38 = vsub.f32 %v1286_v2, %v1376_v35  ;;  %v301_v43 = vstv %s296_s1 }
 0x287   :  { %v312_v39 = vmul.f32 %v305_v34, %v305_v34  ;;  %v313_v41 = vmul.f32 %v306_v36, %v306_v36  ;;  %v302_v44 = vsub.f32 %v1281_v1, %v301_v43  ;;  %v303_v46 = vsub.f32 %v1286_v2, %v301_v43 }
 0x288   :  { %v324_v40 = vmul.f32 %v308_v37, %v308_v37  ;;  %v325_v42 = vmul.f32 %v309_v38, %v309_v38 }
 0x289   :  { %316 = vrot.lane.b32.xlu0 %v312_v39, %s1214_s2  ;;  %v310_v45 = vmul.f32 %v302_v44, %v302_v44  ;;  %v311_v50 = vmul.f32 %v303_v46, %v303_v46 }
 0x28a   :  { %328 = vrot.lane.b32.xlu1 %v324_v40, %s1215_s22 }
 0x28d   :  { %318 = vrot.lane.b32.xlu0 %v313_v41, %s1214_s2 }
 0x28e   :  { %330 = vrot.lane.b32.xlu1 %v325_v42, %s1215_s22 }
 0x2fb   :  { %v317_v47 = vpop.permute.xlu0 %316 }
 0x2fc   :  { %v322_v48 = vadd.f32 %v317_v47, %v310_v45  ;;  %v329_v49 = vpop.permute.xlu1 %328 }
 0x2fe   :  { %v334_v51 = vadd.f32 %v329_v49, %v322_v48 }
 0x2ff   :  { %v319_v52 = vpop.permute.xlu0 %318 }
 0x300   :  { %vm336_vm6 = vcmp.le.f32.partialorder %v334_v51, 2.25  ;;  %v323_v53 = vadd.f32 %v319_v52, %v311_v50  ;;  %v331_v54 = vpop.permute.xlu1 %330 }
 0x301   :  { %v340_v56 = vsel %vm336_vm6, 1.0, %v1213_v0 }
 0x302   :  { %v335_v55 = vadd.f32 %v331_v54, %v323_v53  ;;  %v342_v58 = vsel %vm121_vm1, %v340_v56, -inf }
 0x304   :  { %vm337_vm7 = vcmp.le.f32.partialorder %v335_v55, 2.25 }
 0x305   :  { %v341_v57 = vsel %vm337_vm7, 1.0, %v1213_v0 }
 0x306   :  { %v343_v59 = vsel %vm121_vm1, %v341_v57, -inf }
 0x307   :  { %v344_v60 = vmax.f32 %v342_v58, %v343_v59 }
 0x309   :  { %345 = vmax.xlane.f32.xlu0 %v344_v60 }
 0x392   :  { %v346_v61 = vpop.xlane.xlu0 %345 }
 0x393   :  { %v347_v62 = vrot.slane %v346_v61, 4 }
 0x395   :  { %v348_v63 = vmax.f32 %v346_v61, %v347_v62 }
 0x397   :  { %v349_v3 = vrot.slane %v348_v63, 2 }
 0x399   :  { %v350_v4 = vmax.f32 %v348_v63, %v349_v3 }
 0x39b   :  { %v351_v5 = vrot.slane %v350_v4, 1 }
 0x39d   :  { %v352_v6 = vmax.f32 %v350_v4, %v351_v5 }
 0x39f   :  { %1124 = vpush %v352_v6 }
 0x3d0   :  { %s1125_s10 = spop %1124 }
 0x3d1   :  { %p354_p11 = scmp.gt.f32.partialorder %s1125_s10, 0.0 }
 0x3d2   :  { %v1157_v7 = vld [vmem:[%s1593_s5 + $0x38] sm:$0xff] (%p354_p11)   ;;  %v1219_v8 = vmov (%p354_p11), 0.0   ;;  %v1158_v9 = vld [vmem:[%s1593_s5 + $0x30] sm:$0xff] (%p354_p11)   ;;  %vm1220_vm8 = vmmov (%p354_p11), 0   ;;  %v1221_v10 = vmov (%p354_p11), 0   ;;  %v368_v11 = vlaneseq (%p354_p11)  ;;  %v1159_v13 = vld [vmem:[%s1593_s5 + $0x28] sm:$0xff] (%p354_p11)  }
 0x3d3   :  { %359 = sbr.rel (!%p354_p11) target bundleno = 1230 (0x4ce), region = 49  ;;  %1062 = vmatprep.subr.bf16.mxu0 (%p354_p11), %v1219_v8  ;;  %1078 = vmatprep.mubr.msk.bf16.mxu0 (%p354_p11), %vm1220_vm8, %v1219_v8  ;;  %v491_v12 = vsel (%p354_p11), %vm336_vm6, 1, %v1221_v10  ;;  %v492_v14 = vsel (%p354_p11), %vm337_vm7, 1, %v1221_v10  ;;  %v360_v15 = vld [vmem:[%s1592_s4] sm:$0x1] (%p354_p11)  ;;  %v1161_v26 = vld [vmem:[%s1593_s5 + $0x18] sm:$0xff] (%p354_p11)  }
 0x3d4   :  { %1063 = vmatpush3.bf16.msra.mxu0 (%p354_p11), %v1157_v7  ;;  %1156 = vset.pattern.permute.xlu0 (%p354_p11), %v1221_v10  ;;  %v362_v16 = vld [vmem:[%s1592_s4 + $0x1] sm:$0x1] (%p354_p11)  ;;  %v365_v17 = vld [vmem:[%s1592_s4 + $0x2] sm:$0x1] (%p354_p11)  ;;  %v361_v18 = vmul.f32 (%p354_p11), %v360_v15, %v301_v43  ;;  %v369_v21 = vshrl.u32 (%p354_p11), %v368_v11, 7  ;;  %v1162_v28 = vld [vmem:[%s1593_s5 + $0x10] sm:$0xff] (%p354_p11)  }
 0x3d5   :  { %1064 = vmatprep.subr.bf16.mxu0 (%p354_p11), %v1219_v8  ;;  %494 = vperm.xlu0 (%p354_p11), %1156, %v491_v12   ;;  %v363_v19 = vmul.f32 (%p354_p11), %v362_v16, %v1372_v31  ;;  %v366_v20 = vmul.f32 (%p354_p11), %v365_v17, %v1376_v35  ;;  %v1160_v22 = vld [vmem:[%s1593_s5 + $0x20] sm:$0xff] (%p354_p11)   ;;  %v1163_v31 = vld [vmem:[%s1593_s5 + $0x8] sm:$0xff] (%p354_p11)  }
 0x3d6   :  { %v370_v25 = vsub.s32 (%p354_p11), 0, %v369_v21  ;;  %v1164_v36 = vld [vmem:[%s1593_s5] sm:$0xff] (%p354_p11)  }
 0x3d7   :  { %v364_v23 = vadd.f32 (%p354_p11), %v363_v19, %v361_v18  ;;  %v971_v38 = vld [vmem:[%s1594_s6] ss:$0 sm:$0xff] (%p354_p11)  ;;  %v503_v57 = vld [vmem:[%s1595_s7 + $0x1] sm:$0x1] (%p354_p11) }
 0x3d8   :  { %1065 = vmatpush3.bf16.msra.mxu0 %v1158_v9 }
 0x3d9   :  { %1066 = vmatprep.subr.bf16.mxu0 %v1219_v8  ;;  %497 = vperm.xlu0 %1156, %v492_v14   ;;  %v367_v24 = vadd.f32 %v366_v20, %v364_v23 }
 0x3db   :  { %v371_v27 = vrot.slane %v367_v24, %v370_v25 }
 0x3dc   :  { %1067 = vmatpush3.bf16.msra.mxu0 %v1159_v13 }
 0x3dd   :  { %1068 = vmatprep.subr.bf16.mxu0 %v1219_v8  ;;  %v372_v29 = vadd.f32 %v1319_v32, %v371_v27  ;;  %v373_v30 = vadd.f32 %v1321_v33, %v371_v27 }
 0x3df   :  { %v374_v34 = vmax.f32 %v372_v29, 0.0  ;;  %v375_v35 = vmax.f32 %v373_v30, 0.0 }
 0x3e0   :  { %1069 = vmatpush3.bf16.msra.mxu0 %v1160_v22 }
 0x3e1   :  { %1070 = vmatprep.subr.bf16.mxu0 %v1219_v8  ;;  %v376_v37 = vpack.c.bf16 %v375_v35, %v374_v34 }
 0x3e4   :  { %1071 = vmatpush3.bf16.msra.mxu0 %v1161_v26 }
 0x3e5   :  { %1072 = vmatprep.subr.bf16.mxu0 %v1219_v8 }
 0x3e8   :  { %1073 = vmatpush3.bf16.msra.mxu0 %v1162_v28 }
 0x3e9   :  { %1074 = vmatprep.subr.bf16.mxu0 %v1219_v8 }
 0x3ec   :  { %1075 = vmatpush3.bf16.msra.mxu0 %v1163_v31 }
 0x3ed   :  { %1076 = vmatprep.subr.bf16.mxu0 %v1219_v8 }
 0x3f0   :  { %1077 = vmatpush3.bf16.msra.mxu0 %v1164_v36 }
 0x3f3   :  { %1079 = vmatmul.mubr.bf16.vlgmr.msra.gmra.mxu0 %v376_v37 }
 0x450   :  { %v495_v39 = vpop.permute.xlu0 %494 }
 0x451   :  { %vm499_vm9 = vcmp.eq.s32.totalorder %v495_v39, 1 }
 0x454   :  { %v498_v45 = vpop.permute.xlu0 %497 }
 0x455   :  { %vm500_vm10 = vcmp.eq.s32.totalorder %v498_v45, 1 }
 0x4b3   :  { %v482_v40 = vpop.f32.mrf.mxu0 }
 0x4b4   :  { %v483_v41 = vadd.f32 %v971_v38, %v482_v40 }
 0x4b5   :  { %v1080_v42 = vpop.f32.mrf.mxu0 }
 0x4b6   :  { %v489_v44 = vmax.f32 %v483_v41, 0.0 }
 0x4b7   :  { %v485_v43 = vpop.f32.mrf.mxu0 }
 0x4b8   :  { %v486_v46 = vadd.f32 %v971_v38, %v485_v43  ;;  %v501_v49 = vsel %vm499_vm9, %v489_v44, 0.0 }
 0x4b9   :  { %v1081_v47 = vpop.f32.mrf.mxu0 }
 0x4ba   :  { %v490_v48 = vmax.f32 %v486_v46, 0.0 }
 0x4bc   :  { %v502_v50 = vsel %vm500_vm10, %v490_v48, 0.0 }
 0x4bd   :  { %v504_v51 = vmax.f32 %v501_v49, %v502_v50 }
 0x4bf   :  { %v505_v52 = vrot.slane %v504_v51, 4 }
 0x4c1   :  { %v506_v53 = vmax.f32 %v504_v51, %v505_v52 }
 0x4c3   :  { %v507_v54 = vrot.slane %v506_v53, 2 }
 0x4c5   :  { %v508_v55 = vmax.f32 %v506_v53, %v507_v54 }
 0x4c7   :  { %v509_v56 = vrot.slane %v508_v55, 1 }
 0x4c9   :  { %v510_v58 = vmax.f32 %v508_v55, %v509_v56 }
 0x4cb   :  { %v511_v59 = vmax.f32 %v503_v57, %v510_v58 }
 0x4cd   :  { %512 = vst [vmem:[%s1595_s7 + $0x1] sm:$0x1] %v511_v59 }
 0x4ce PF:  { %s980_s14 = sld [smem:[#allocation2 + $0x2]] }
 0x4d4   :  { %s515_s15 = smul.u32 3, %s980_s14 }
 0x4d6   :  { %s517_s16 = sadd.s32 1, %s515_s15  ;;  %s519_s17 = sadd.s32 2, %s515_s15 }
 0x4d7   :  { %s518_s18 = sld [smem:[#allocation4 + %s517_s16]] }
 0x4d8   :  { %s520_s19 = sld [smem:[#allocation4 + %s519_s17]] }
 0x4d9   :  { %s516_s20 = sld [smem:[#allocation4 + %s515_s15]] }
 0x4dd   :  { %v1444_v60 = vstv %s518_s18 }
 0x4de   :  { %v525_v61 = vsub.f32 %v1281_v1, %v1444_v60  ;;  %v1448_v62 = vstv %s520_s19  ;;  %v526_v63 = vsub.f32 %v1286_v2, %v1444_v60 }
 0x4df   :  { %v528_v3 = vsub.f32 %v1281_v1, %v1448_v62  ;;  %v529_v4 = vsub.f32 %v1286_v2, %v1448_v62  ;;  %v521_v9 = vstv %s516_s20 }
 0x4e0   :  { %v532_v5 = vmul.f32 %v525_v61, %v525_v61  ;;  %v533_v7 = vmul.f32 %v526_v63, %v526_v63  ;;  %v522_v10 = vsub.f32 %v1281_v1, %v521_v9  ;;  %v523_v12 = vsub.f32 %v1286_v2, %v521_v9 }
 0x4e1   :  { %v544_v6 = vmul.f32 %v528_v3, %v528_v3  ;;  %v545_v8 = vmul.f32 %v529_v4, %v529_v4 }
 0x4e2   :  { %536 = vrot.lane.b32.xlu0 %v532_v5, %s1214_s2  ;;  %v530_v11 = vmul.f32 %v522_v10, %v522_v10  ;;  %v531_v16 = vmul.f32 %v523_v12, %v523_v12 }
 0x4e3   :  { %548 = vrot.lane.b32.xlu1 %v544_v6, %s1215_s22 }
 0x4e6   :  { %538 = vrot.lane.b32.xlu0 %v533_v7, %s1214_s2 }
 0x4e7   :  { %550 = vrot.lane.b32.xlu1 %v545_v8, %s1215_s22 }
 0x554   :  { %v537_v13 = vpop.permute.xlu0 %536 }
 0x555   :  { %v542_v14 = vadd.f32 %v537_v13, %v530_v11  ;;  %v549_v15 = vpop.permute.xlu1 %548 }
 0x557   :  { %v554_v17 = vadd.f32 %v549_v15, %v542_v14 }
 0x558   :  { %v539_v18 = vpop.permute.xlu0 %538 }
 0x559   :  { %vm556_vm11 = vcmp.le.f32.partialorder %v554_v17, 2.25  ;;  %v543_v19 = vadd.f32 %v539_v18, %v531_v16  ;;  %v551_v20 = vpop.permute.xlu1 %550 }
 0x55a   :  { %v560_v22 = vsel %vm556_vm11, 1.0, %v1213_v0 }
 0x55b   :  { %v555_v21 = vadd.f32 %v551_v20, %v543_v19  ;;  %v562_v24 = vsel %vm121_vm1, %v560_v22, -inf }
 0x55d   :  { %vm557_vm12 = vcmp.le.f32.partialorder %v555_v21, 2.25 }
 0x55e   :  { %v561_v23 = vsel %vm557_vm12, 1.0, %v1213_v0 }
 0x55f   :  { %v563_v25 = vsel %vm121_vm1, %v561_v23, -inf }
 0x560   :  { %v564_v26 = vmax.f32 %v562_v24, %v563_v25 }
 0x562   :  { %565 = vmax.xlane.f32.xlu0 %v564_v26 }
 0x5eb   :  { %v566_v27 = vpop.xlane.xlu0 %565 }
 0x5ec   :  { %v567_v28 = vrot.slane %v566_v27, 4 }
 0x5ee   :  { %v568_v29 = vmax.f32 %v566_v27, %v567_v28 }
 0x5f0   :  { %v569_v30 = vrot.slane %v568_v29, 2 }
 0x5f2   :  { %v570_v31 = vmax.f32 %v568_v29, %v569_v30 }
 0x5f4   :  { %v571_v34 = vrot.slane %v570_v31, 1 }
 0x5f6   :  { %v572_v35 = vmax.f32 %v570_v31, %v571_v34 }
 0x5f8   :  { %1126 = vpush %v572_v35 }
 0x629   :  { %s1127_s21 = spop %1126 }
 0x62a   :  { %p574_p12 = scmp.gt.f32.partialorder %s1127_s21, 0.0 }
 0x62b   :  { %v1166_v36 = vld [vmem:[%s1593_s5 + $0x38] sm:$0xff] (%p574_p12)   ;;  %v1222_v37 = vmov (%p574_p12), 0.0   ;;  %v1167_v38 = vld [vmem:[%s1593_s5 + $0x30] sm:$0xff] (%p574_p12)   ;;  %vm1223_vm13 = vmmov (%p574_p12), 0   ;;  %v1224_v39 = vmov (%p574_p12), 0   ;;  %v588_v40 = vlaneseq (%p574_p12)  ;;  %v1168_v42 = vld [vmem:[%s1593_s5 + $0x28] sm:$0xff] (%p574_p12)  }
 0x62c   :  { %579 = sbr.rel (!%p574_p12) target bundleno = 1831 (0x727), region = 53  ;;  %1082 = vmatprep.subr.bf16.mxu0 (%p574_p12), %v1222_v37  ;;  %1098 = vmatprep.mubr.msk.bf16.mxu0 (%p574_p12), %vm1223_vm13, %v1222_v37  ;;  %v711_v41 = vsel (%p574_p12), %vm556_vm11, 1, %v1224_v39  ;;  %v712_v43 = vsel (%p574_p12), %vm557_vm12, 1, %v1224_v39  ;;  %v580_v44 = vld [vmem:[%s1592_s4] sm:$0x1] (%p574_p12)  ;;  %v1170_v55 = vld [vmem:[%s1593_s5 + $0x18] sm:$0xff] (%p574_p12)  }
 0x62d   :  { %1083 = vmatpush3.bf16.msra.mxu0 (%p574_p12), %v1166_v36  ;;  %1165 = vset.pattern.permute.xlu0 (%p574_p12), %v1224_v39  ;;  %v582_v45 = vld [vmem:[%s1592_s4 + $0x1] sm:$0x1] (%p574_p12)  ;;  %v585_v46 = vld [vmem:[%s1592_s4 + $0x2] sm:$0x1] (%p574_p12)  ;;  %v581_v47 = vmul.f32 (%p574_p12), %v580_v44, %v521_v9  ;;  %v589_v50 = vshrl.u32 (%p574_p12), %v588_v40, 7  ;;  %v1171_v57 = vld [vmem:[%s1593_s5 + $0x10] sm:$0xff] (%p574_p12)  }
 0x62e   :  { %1084 = vmatprep.subr.bf16.mxu0 (%p574_p12), %v1222_v37  ;;  %714 = vperm.xlu0 (%p574_p12), %1165, %v711_v41   ;;  %v583_v48 = vmul.f32 (%p574_p12), %v582_v45, %v1444_v60  ;;  %v586_v49 = vmul.f32 (%p574_p12), %v585_v46, %v1448_v62  ;;  %v1169_v51 = vld [vmem:[%s1593_s5 + $0x20] sm:$0xff] (%p574_p12)   ;;  %v1172_v60 = vld [vmem:[%s1593_s5 + $0x8] sm:$0xff] (%p574_p12)  }
 0x62f   :  { %v590_v54 = vsub.s32 (%p574_p12), 0, %v589_v50  ;;  %v1173_v63 = vld [vmem:[%s1593_s5] sm:$0xff] (%p574_p12)  }
 0x630   :  { %v584_v52 = vadd.f32 (%p574_p12), %v583_v48, %v581_v47  ;;  %v982_v4 = vld [vmem:[%s1594_s6] ss:$0 sm:$0xff] (%p574_p12)  ;;  %v723_v23 = vld [vmem:[%s1595_s7 + $0x2] sm:$0x1] (%p574_p12) }
 0x631   :  { %1085 = vmatpush3.bf16.msra.mxu0 %v1167_v38 }
 0x632   :  { %1086 = vmatprep.subr.bf16.mxu0 %v1222_v37  ;;  %717 = vperm.xlu0 %1165, %v712_v43   ;;  %v587_v53 = vadd.f32 %v586_v49, %v584_v52 }
 0x634   :  { %v591_v56 = vrot.slane %v587_v53, %v590_v54 }
 0x635   :  { %1087 = vmatpush3.bf16.msra.mxu0 %v1168_v42 }
 0x636   :  { %1088 = vmatprep.subr.bf16.mxu0 %v1222_v37  ;;  %v592_v58 = vadd.f32 %v1319_v32, %v591_v56  ;;  %v593_v59 = vadd.f32 %v1321_v33, %v591_v56 }
 0x638   :  { %v594_v61 = vmax.f32 %v592_v58, 0.0  ;;  %v595_v62 = vmax.f32 %v593_v59, 0.0 }
 0x639   :  { %1089 = vmatpush3.bf16.msra.mxu0 %v1169_v51 }
 0x63a   :  { %1090 = vmatprep.subr.bf16.mxu0 %v1222_v37  ;;  %v596_v3 = vpack.c.bf16 %v595_v62, %v594_v61 }
 0x63d   :  { %1091 = vmatpush3.bf16.msra.mxu0 %v1170_v55 }
 0x63e   :  { %1092 = vmatprep.subr.bf16.mxu0 %v1222_v37 }
 0x641   :  { %1093 = vmatpush3.bf16.msra.mxu0 %v1171_v57 }
 0x642   :  { %1094 = vmatprep.subr.bf16.mxu0 %v1222_v37 }
 0x645   :  { %1095 = vmatpush3.bf16.msra.mxu0 %v1172_v60 }
 0x646   :  { %1096 = vmatprep.subr.bf16.mxu0 %v1222_v37 }
 0x649   :  { %1097 = vmatpush3.bf16.msra.mxu0 %v1173_v63 }
 0x64c   :  { %1099 = vmatmul.mubr.bf16.vlgmr.msra.gmra.mxu0 %v596_v3 }
 0x6a9   :  { %v715_v5 = vpop.permute.xlu0 %714 }
 0x6aa   :  { %vm719_vm14 = vcmp.eq.s32.totalorder %v715_v5, 1 }
 0x6ad   :  { %v718_v11 = vpop.permute.xlu0 %717 }
 0x6ae   :  { %vm720_vm15 = vcmp.eq.s32.totalorder %v718_v11, 1 }
 0x70c   :  { %v702_v6 = vpop.f32.mrf.mxu0 }
 0x70d   :  { %v703_v7 = vadd.f32 %v982_v4, %v702_v6 }
 0x70e   :  { %v1100_v8 = vpop.f32.mrf.mxu0 }
 0x70f   :  { %v709_v10 = vmax.f32 %v703_v7, 0.0 }
 0x710   :  { %v705_v9 = vpop.f32.mrf.mxu0 }
 0x711   :  { %v706_v12 = vadd.f32 %v982_v4, %v705_v9  ;;  %v721_v15 = vsel %vm719_vm14, %v709_v10, 0.0 }
 0x712   :  { %v1101_v13 = vpop.f32.mrf.mxu0 }
 0x713   :  { %v710_v14 = vmax.f32 %v706_v12, 0.0 }
 0x715   :  { %v722_v16 = vsel %vm720_vm15, %v710_v14, 0.0 }
 0x716   :  { %v724_v17 = vmax.f32 %v721_v15, %v722_v16 }
 0x718   :  { %v725_v18 = vrot.slane %v724_v17, 4 }
 0x71a   :  { %v726_v19 = vmax.f32 %v724_v17, %v725_v18 }
 0x71c   :  { %v727_v20 = vrot.slane %v726_v19, 2 }
 0x71e   :  { %v728_v21 = vmax.f32 %v726_v19, %v727_v20 }
 0x720   :  { %v729_v22 = vrot.slane %v728_v21, 1 }
 0x722   :  { %v730_v24 = vmax.f32 %v728_v21, %v729_v22 }
 0x724   :  { %v731_v25 = vmax.f32 %v723_v23, %v730_v24 }
 0x726   :  { %732 = vst [vmem:[%s1595_s7 + $0x2] sm:$0x1] %v731_v25 }
 0x727 PF:  { %s991_s26 = sld [smem:[#allocation2 + $0x3]] }
 0x72d   :  { %s735_s27 = smul.u32 3, %s991_s26 }
 0x72f   :  { %s737_s3 = sadd.s32 1, %s735_s27  ;;  %s739_s28 = sadd.s32 2, %s735_s27 }
 0x730   :  { %s738_s29 = sld [smem:[#allocation4 + %s737_s3]] }
 0x731   :  { %s740_s30 = sld [smem:[#allocation4 + %s739_s28]] }
 0x732   :  { %s736_s8 = sld [smem:[#allocation4 + %s735_s27]] }
 0x736   :  { %v1516_v26 = vstv %s738_s29 }
 0x737   :  { %v745_v27 = vsub.f32 %v1281_v1, %v1516_v26  ;;  %v1520_v28 = vstv %s740_s30  ;;  %v746_v29 = vsub.f32 %v1286_v2, %v1516_v26 }
 0x738   :  { %v748_v30 = vsub.f32 %v1281_v1, %v1520_v28  ;;  %v749_v31 = vsub.f32 %v1286_v2, %v1520_v28  ;;  %v741_v38 = vstv %s736_s8 }
 0x739   :  { %v752_v34 = vmul.f32 %v745_v27, %v745_v27  ;;  %v753_v36 = vmul.f32 %v746_v29, %v746_v29  ;;  %v742_v39 = vsub.f32 %v1281_v1, %v741_v38  ;;  %v743_v41 = vsub.f32 %v1286_v2, %v741_v38 }
 0x73a   :  { %v764_v35 = vmul.f32 %v748_v30, %v748_v30  ;;  %v765_v37 = vmul.f32 %v749_v31, %v749_v31 }
 0x73b   :  { %756 = vrot.lane.b32.xlu0 %v752_v34, %s1214_s2  ;;  %v750_v40 = vmul.f32 %v742_v39, %v742_v39  ;;  %v751_v45 = vmul.f32 %v743_v41, %v743_v41 }
 0x73c   :  { %768 = vrot.lane.b32.xlu1 %v764_v35, %s1215_s22 }
 0x73f   :  { %758 = vrot.lane.b32.xlu0 %v753_v36, %s1214_s2 }
 0x740   :  { %770 = vrot.lane.b32.xlu1 %v765_v37, %s1215_s22 }
 0x7ad   :  { %v757_v42 = vpop.permute.xlu0 %756 }
 0x7ae   :  { %v762_v43 = vadd.f32 %v757_v42, %v750_v40  ;;  %v769_v44 = vpop.permute.xlu1 %768 }
 0x7b0   :  { %v774_v46 = vadd.f32 %v769_v44, %v762_v43 }
 0x7b1   :  { %v759_v47 = vpop.permute.xlu0 %758 }
 0x7b2   :  { %vm776_vm0 = vcmp.le.f32.partialorder %v774_v46, 2.25  ;;  %v763_v48 = vadd.f32 %v759_v47, %v751_v45  ;;  %v771_v49 = vpop.permute.xlu1 %770 }
 0x7b3   :  { %v780_v51 = vsel %vm776_vm0, 1.0, %v1213_v0 }
 0x7b4   :  { %v775_v50 = vadd.f32 %v771_v49, %v763_v48  ;;  %v782_v52 = vsel %vm121_vm1, %v780_v51, -inf }
 0x7b6   :  { %vm777_vm2 = vcmp.le.f32.partialorder %v775_v50, 2.25 }
 0x7b7   :  { %v781_v1 = vsel %vm777_vm2, 1.0, %v1213_v0 }
 0x7b8   :  { %v783_v2 = vsel %vm121_vm1, %v781_v1, -inf }
 0x7b9   :  { %v784_v53 = vmax.f32 %v782_v52, %v783_v2 }
 0x7bb   :  { %785 = vmax.xlane.f32.xlu0 %v784_v53 }
 0x844   :  { %v786_v54 = vpop.xlane.xlu0 %785 }
 0x845   :  { %v787_v55 = vrot.slane %v786_v54, 4 }
 0x847   :  { %v788_v56 = vmax.f32 %v786_v54, %v787_v55 }
 0x849   :  { %v789_v57 = vrot.slane %v788_v56, 2 }
 0x84b   :  { %v790_v58 = vmax.f32 %v788_v56, %v789_v57 }
 0x84d   :  { %v791_v59 = vrot.slane %v790_v58, 1 }
 0x84f   :  { %v792_v60 = vmax.f32 %v790_v58, %v791_v59 }
 0x851   :  { %1128 = vpush %v792_v60 }
 0x882   :  { %s1129_s2 = spop %1128 }
 0x883   :  { %p794_p13 = scmp.gt.f32.partialorder %s1129_s2, 0.0 }
 0x884   :  { %v1175_v0 = vld [vmem:[%s1593_s5 + $0x38] sm:$0xff] (%p794_p13)   ;;  %v1225_v61 = vmov (%p794_p13), 0.0   ;;  %v1176_v62 = vld [vmem:[%s1593_s5 + $0x30] sm:$0xff] (%p794_p13)   ;;  %vm1226_vm1 = vmmov (%p794_p13), 0   ;;  %v1227_v63 = vmov (%p794_p13), 0   ;;  %v808_v3 = vlaneseq (%p794_p13)  ;;  %v1177_v5 = vld [vmem:[%s1593_s5 + $0x28] sm:$0xff] (%p794_p13)  }
 0x885   :  { %799 = sbr.rel (!%p794_p13) target bundleno = 2432 (0x980), region = 57  ;;  %1102 = vmatprep.subr.bf16.mxu0 (%p794_p13), %v1225_v61  ;;  %1118 = vmatprep.mubr.msk.bf16.mxu0 (%p794_p13), %vm1226_vm1, %v1225_v61  ;;  %v931_v4 = vsel (%p794_p13), %vm776_vm0, 1, %v1227_v63  ;;  %v932_v6 = vsel (%p794_p13), %vm777_vm2, 1, %v1227_v63  ;;  %v800_v7 = vld [vmem:[%s1592_s4] sm:$0x1] (%p794_p13)  ;;  %v1179_v18 = vld [vmem:[%s1593_s5 + $0x18] sm:$0xff] (%p794_p13)  }
 0x886   :  { %1103 = vmatpush3.bf16.msra.mxu0 (%p794_p13), %v1175_v0  ;;  %1174 = vset.pattern.permute.xlu0 (%p794_p13), %v1227_v63  ;;  %v802_v8 = vld [vmem:[%s1592_s4 + $0x1] sm:$0x1] (%p794_p13)  ;;  %v805_v9 = vld [vmem:[%s1592_s4 + $0x2] sm:$0x1] (%p794_p13)  ;;  %v801_v10 = vmul.f32 (%p794_p13), %v800_v7, %v741_v38  ;;  %v809_v13 = vshrl.u32 (%p794_p13), %v808_v3, 7  ;;  %v1180_v20 = vld [vmem:[%s1593_s5 + $0x10] sm:$0xff] (%p794_p13)  }
 0x887   :  { %1104 = vmatprep.subr.bf16.mxu0 (%p794_p13), %v1225_v61  ;;  %934 = vperm.xlu0 (%p794_p13), %1174, %v931_v4   ;;  %v803_v11 = vmul.f32 (%p794_p13), %v802_v8, %v1516_v26  ;;  %v806_v12 = vmul.f32 (%p794_p13), %v805_v9, %v1520_v28  ;;  %v1178_v14 = vld [vmem:[%s1593_s5 + $0x20] sm:$0xff] (%p794_p13)   ;;  %v1181_v23 = vld [vmem:[%s1593_s5 + $0x8] sm:$0xff] (%p794_p13)  }
 0x888   :  { %v810_v17 = vsub.s32 (%p794_p13), 0, %v809_v13  ;;  %v1182_v26 = vld [vmem:[%s1593_s5] sm:$0xff] (%p794_p13)  }
 0x889   :  { %v804_v15 = vadd.f32 (%p794_p13), %v803_v11, %v801_v10  ;;  %v943_v47 = vld [vmem:[%s1595_s7 + $0x3] sm:$0x1] (%p794_p13) }
 0x88a   :  { %1105 = vmatpush3.bf16.msra.mxu0 %v1176_v62 }
 0x88b   :  { %1106 = vmatprep.subr.bf16.mxu0 %v1225_v61  ;;  %937 = vperm.xlu0 %1174, %v932_v6   ;;  %v807_v16 = vadd.f32 %v806_v12, %v804_v15 }
 0x88d   :  { %v811_v19 = vrot.slane %v807_v16, %v810_v17 }
 0x88e   :  { %1107 = vmatpush3.bf16.msra.mxu0 %v1177_v5 }
 0x88f   :  { %1108 = vmatprep.subr.bf16.mxu0 %v1225_v61  ;;  %v812_v21 = vadd.f32 %v1319_v32, %v811_v19  ;;  %v813_v22 = vadd.f32 %v1321_v33, %v811_v19  ;;  %v993_v32 = vld [vmem:[%s1594_s6] ss:$0 sm:$0xff] }
 0x891   :  { %v814_v24 = vmax.f32 %v812_v21, 0.0  ;;  %v815_v25 = vmax.f32 %v813_v22, 0.0 }
 0x892   :  { %1109 = vmatpush3.bf16.msra.mxu0 %v1178_v14 }
 0x893   :  { %1110 = vmatprep.subr.bf16.mxu0 %v1225_v61  ;;  %v816_v27 = vpack.c.bf16 %v815_v25, %v814_v24 }
 0x896   :  { %1111 = vmatpush3.bf16.msra.mxu0 %v1179_v18 }
 0x897   :  { %1112 = vmatprep.subr.bf16.mxu0 %v1225_v61 }
 0x89a   :  { %1113 = vmatpush3.bf16.msra.mxu0 %v1180_v20 }
 0x89b   :  { %1114 = vmatprep.subr.bf16.mxu0 %v1225_v61 }
 0x89e   :  { %1115 = vmatpush3.bf16.msra.mxu0 %v1181_v23 }
 0x89f   :  { %1116 = vmatprep.subr.bf16.mxu0 %v1225_v61 }
 0x8a2   :  { %1117 = vmatpush3.bf16.msra.mxu0 %v1182_v26 }
 0x8a5   :  { %1119 = vmatmul.mubr.bf16.vlgmr.msra.gmra.mxu0 %v816_v27 }
 0x902   :  { %v935_v33 = vpop.permute.xlu0 %934 }
 0x903   :  { %vm939_vm3 = vcmp.eq.s32.totalorder %v935_v33, 1 }
 0x906   :  { %v938_v35 = vpop.permute.xlu0 %937 }
 0x907   :  { %vm940_vm4 = vcmp.eq.s32.totalorder %v938_v35, 1 }
 0x965   :  { %v922_v28 = vpop.f32.mrf.mxu0 }
 0x966   :  { %v923_v29 = vadd.f32 %v993_v32, %v922_v28 }
 0x967   :  { %v1120_v30 = vpop.f32.mrf.mxu0 }
 0x968   :  { %v929_v34 = vmax.f32 %v923_v29, 0.0 }
 0x969   :  { %v925_v31 = vpop.f32.mrf.mxu0 }
 0x96a   :  { %v926_v36 = vadd.f32 %v993_v32, %v925_v31  ;;  %v941_v39 = vsel %vm939_vm3, %v929_v34, 0.0 }
 0x96b   :  { %v1121_v37 = vpop.f32.mrf.mxu0 }
 0x96c   :  { %v930_v38 = vmax.f32 %v926_v36, 0.0 }
 0x96e   :  { %v942_v40 = vsel %vm940_vm4, %v930_v38, 0.0 }
 0x96f   :  { %v944_v41 = vmax.f32 %v941_v39, %v942_v40 }
 0x971   :  { %v945_v42 = vrot.slane %v944_v41, 4 }
 0x973   :  { %v946_v43 = vmax.f32 %v944_v41, %v945_v42 }
 0x975   :  { %v947_v44 = vrot.slane %v946_v43, 2 }
 0x977   :  { %v948_v45 = vmax.f32 %v946_v43, %v947_v44 }
 0x979   :  { %v949_v46 = vrot.slane %v948_v45, 1 }
 0x97b   :  { %v950_v48 = vmax.f32 %v948_v45, %v949_v46 }
 0x97d   :  { %v951_v49 = vmax.f32 %v943_v47, %v950_v48 }
 0x97f   :  { %952 = vst [vmem:[%s1595_s7 + $0x3] sm:$0x1] %v951_v49 }
 0x980 PF:  { %957 = vsyncpa [#allocation3], 1 }
 0x981   :  { %958 = vsyncpa [#allocation5], 1 }

</bundles_post_ra>
